<compile_context>
chip_gen: v5e
topology: v5e:2x2
jax: 0.10.0
libtpu: 0.0.40
codegen_flags: <defaults>
</compile_context>

<pallas_src>
import functools

import numpy as np
import jax
import jax.numpy as jnp
from jax import lax
from jax.experimental import pallas as pl
from jax.experimental.pallas import tpu as pltpu


# -----------------------------------------------------------------------------
# Fused kernel
# -----------------------------------------------------------------------------
def _densenet_block_kernel(x_ref, g1_ref, b1_ref, g2_ref, b2_ref,
                           w1_ref, w2_ref, mask_ref, out_ref, *, W, eps):
    """Fully fused DenseNet block, batch folded into the lane axis.

    x_ref:    (CIN, L)        input, L = N*H*W on the 128-lane axis, f32
    g1/b1:    (CIN, 1)        BN1 gamma / beta, f32
    g2/b2:    (CINNER, 1)     BN2 gamma / beta, f32
    w1_ref:   (CINNER, CIN)   1x1 conv weight, bf16
    w2_ref:   (9, G, CINNER)  3x3 conv weight, tap-major (ky, kx), bf16
    mask_ref: (9, L)          per-tap validity mask tiled per image, f32
    out_ref:  (CIN+G, L)      concat([x, conv_out], channel axis), f32
    """
    CIN, L = x_ref.shape
    G = w2_ref.shape[1]
    inv = 1.0 / L

    x = x_ref[...]                                          # (CIN, L)

    # ---- BN1 batch stats (one pass: sum + sum-of-squares) -> folded scale/shift
    m1 = jnp.sum(x, axis=1, keepdims=True) * inv            # (CIN, 1)
    e1 = jnp.sum(x * x, axis=1, keepdims=True) * inv
    v1 = e1 - m1 * m1                                       # biased variance
    s1 = g1_ref[...] * lax.rsqrt(v1 + eps)
    t1 = b1_ref[...] - m1 * s1

    # ---- fused BN1 + ReLU + 1x1 conv (bf16 MXU operands, f32 accumulation)
    z1 = jnp.maximum(x * s1 + t1, 0.0).astype(jnp.bfloat16)  # (CIN, L)
    y = jnp.dot(w1_ref[...], z1,
                preferred_element_type=jnp.float32)          # (CINNER, L) f32

    # ---- BN2 batch stats -> folded scale/shift
    m2 = jnp.sum(y, axis=1, keepdims=True) * inv             # (CINNER, 1)
    e2 = jnp.sum(y * y, axis=1, keepdims=True) * inv
    v2 = e2 - m2 * m2
    s2 = g2_ref[...] * lax.rsqrt(v2 + eps)
    t2 = b2_ref[...] - m2 * s2

    # ---- fused BN2 + ReLU
    z2 = jnp.maximum(y * s2 + t2, 0.0).astype(jnp.bfloat16)  # (CINNER, L)

    # ---- 3x3 conv, pad=1: per tap, thin MXU dot -> roll the (G, L) partial
    #      output by the tap offset -> zero lanes whose neighbour is outside
    #      the image (this also kills roll wrap-around at image seams).
    masks = mask_ref[...]                                     # (9, L)
    acc = jnp.zeros((G, L), jnp.float32)
    for t in range(9):
        ky, kx = t // 3, t % 3
        d = (ky - 1) * W + (kx - 1)                           # neighbour offset
        part = jnp.dot(w2_ref[t], z2,
                       preferred_element_type=jnp.float32)    # (G, L)
        if d != 0:
            # jnp.roll semantics: out[p] = part[p + d]  (shift = (-d) mod L)
            part = pltpu.roll(part, shift=(-d) % L, axis=1)
        acc = acc + part * masks[t:t + 1, :]

    # ---- concat([x, conv_out], channel axis): assemble in vregs, one aligned store
    out_ref[...] = jnp.concatenate([x, acc], axis=0)


# -----------------------------------------------------------------------------
# Wrapper
# -----------------------------------------------------------------------------
def _tap_masks(H, W):
    """(9, H*W) f32: mask[t, p]=1 iff neighbour (dy,dx)=(t//3-1, t%3-1) of output
    pixel p lies inside the image (otherwise the conv reads zero padding)."""
    r = np.arange(H).reshape(H, 1)
    c = np.arange(W).reshape(1, W)
    rows = []
    for ky in range(3):
        for kx in range(3):
            dy, dx = ky - 1, kx - 1
            ok = (r + dy >= 0) & (r + dy < H) & (c + dx >= 0) & (c + dx < W)
            rows.append(np.broadcast_to(ok, (H, W)).reshape(H * W))
    return np.stack(rows, axis=0).astype(np.float32)


@jax.jit
def densenet_block_forward(x_nchw, params):
    eps = 1e-5
    x = x_nchw.astype(jnp.float32)
    N, CIN, H, W = x.shape
    P = H * W
    L = N * P
    CINNER = params["w1"].shape[0]
    G = params["w2"].shape[0]

    # Batch folded into the lane axis: (N, CIN, H, W) -> (CIN, N*H*W).
    x_flat = jnp.transpose(x, (1, 0, 2, 3)).reshape(CIN, L)

    # 1x1 conv weight (CINNER, CIN) and 3x3 conv weight OIHW -> tap-major
    # (9, G, CINNER); both prepared as bf16 MXU operands.
    w1 = params["w1"].astype(jnp.bfloat16)
    w2taps = (jnp.transpose(params["w2"], (2, 3, 0, 1))
              .reshape(9, G, CINNER).astype(jnp.bfloat16))

    # Per-tap validity masks, tiled once per image along the lane axis
    # (compile-time constant).
    masks = jnp.asarray(np.tile(_tap_masks(H, W), (1, N)))   # (9, L)

    kernel = functools.partial(_densenet_block_kernel, W=W, eps=eps)

    # TODO(synk): for realistic DenseNet sizes (large CIN/H/W/N) add a BlockSpec
    # grid over batch/spatial tiles with dimension_semantics=("parallel",...) so
    # v7x's second TensorCore is used and the working set fits its 64 MiB VMEM;
    # at this test size everything fits comfortably resident with grid=().
    out = pl.pallas_call(
        kernel,
        out_shape=jax.ShapeDtypeStruct((CIN + G, L), jnp.float32),
        in_specs=[pl.BlockSpec(memory_space=pltpu.MemorySpace.VMEM)] * 8,
        out_specs=pl.BlockSpec(memory_space=pltpu.MemorySpace.VMEM),
    )(
        x_flat,
        params["gamma1"].reshape(CIN, 1),
        params["beta1"].reshape(CIN, 1),
        params["gamma2"].reshape(CINNER, 1),
        params["beta2"].reshape(CINNER, 1),
        w1,
        w2taps,
        masks,
    )
    # (CIN+G, N*H*W) -> (N, CIN+G, H, W)
    return jnp.transpose(out.reshape(CIN + G, N, H, W), (1, 0, 2, 3))


# -----------------------------------------------------------------------------
# Pure-JAX reference (NCHW, training-mode BatchNorm).  `matmul_dtype` lets us
# build a precision-matched reference (bf16 MXU operands, f32 accumulation).
# -----------------------------------------------------------------------------
def reference_forward(x_nchw, params, eps=1e-5, matmul_dtype=jnp.float32):
    x = x_nchw.astype(jnp.float32)

    def bn_relu(v, gamma, beta):
        m = jnp.mean(v, axis=(0, 2, 3), keepdims=True)
        var = jnp.mean((v - m) ** 2, axis=(0, 2, 3), keepdims=True)
        g = gamma[None, :, None, None]
        b = beta[None, :, None, None]
        return jnp.maximum(g * (v - m) / jnp.sqrt(var + eps) + b, 0.0)

    z1 = bn_relu(x, params["gamma1"], params["beta1"])
    y = jnp.einsum("oc,nchw->nohw",
                   params["w1"].astype(matmul_dtype), z1.astype(matmul_dtype),
                   preferred_element_type=jnp.float32,
                   precision=lax.Precision.HIGHEST)
    z2 = bn_relu(y, params["gamma2"], params["beta2"])
    out = lax.conv_general_dilated(
        z2.astype(matmul_dtype), params["w2"].astype(matmul_dtype),
        window_strides=(1, 1), padding="SAME",
        dimension_numbers=("NCHW", "OIHW", "NCHW"),
        preferred_element_type=jnp.float32,
        precision=lax.Precision.HIGHEST)
    return jnp.concatenate([x, out], axis=1)


if __name__ == "__main__":
    # Module config: in_channels=4, growth_rate=8, bottleneck_width=4 -> inner=32
    N, CIN, H, W = 2, 4, 16, 16
    growth, bottleneck = 8, 4
    CINNER = bottleneck * growth

    key = jax.random.PRNGKey(0)
    k = jax.random.split(key, 7)
    params = {
        # BatchNorm affine params (deterministic, non-trivial)
        "gamma1": 1.0 + 0.1 * jax.random.normal(k[0], (CIN,), jnp.float32),
        "beta1": 0.1 * jax.random.normal(k[1], (CIN,), jnp.float32),
        "gamma2": 1.0 + 0.1 * jax.random.normal(k[2], (CINNER,), jnp.float32),
        "beta2": 0.1 * jax.random.normal(k[3], (CINNER,), jnp.float32),
        # PyTorch conv1 weight (inner, in, 1, 1) stored squeezed as (inner, in);
        # PyTorch conv2 weight kept in OIHW (growth, inner, 3, 3).
        "w1": 0.2 * jax.random.normal(k[4], (CINNER, CIN), jnp.float32),
        "w2": 0.1 * jax.random.normal(k[5], (growth, CINNER, 3, 3), jnp.float32),
    }
    x = jax.random.normal(k[6], (N, CIN, H, W), jnp.float32)

    out = jax.block_until_ready(densenet_block_forward(x, params))
    assert out.shape == (N, CIN + growth, H, W), out.shape

    # Structural check vs a precision-matched reference (same bf16 operand
    # rounding at the matmuls, f32 everywhere else) -- tight tolerance.
    ref_bf16 = jax.block_until_ready(
        reference_forward(x, params, matmul_dtype=jnp.bfloat16))
    if not jnp.allclose(out, ref_bf16, atol=5e-3, rtol=5e-3):
        max_err = jnp.max(jnp.abs(out - ref_bf16))
        raise AssertionError(
            f"mismatch vs bf16-matched reference, max abs err = {max_err}")

    # Sanity check vs the full-f32 reference; the (small) gap is purely the
    # bf16 MXU-operand rounding requested by the perf review.
    ref_f32 = jax.block_until_ready(reference_forward(x, params))
    if not jnp.allclose(out, ref_f32, atol=5e-2, rtol=5e-2):
        max_err = jnp.max(jnp.abs(out - ref_f32))
        raise AssertionError(
            f"mismatch vs f32 reference, max abs err = {max_err}")

    print("KERNEL_OK")
</pallas_src>

<mosaic_0001>
module attributes {stable_mosaic.version = 11 : i64} {
  func.func @_densenet_block_kernel(%arg0: memref<4x512xf32, #tpu.memory_space<vmem>>, %arg1: memref<4x1xf32, #tpu.memory_space<vmem>>, %arg2: memref<4x1xf32, #tpu.memory_space<vmem>>, %arg3: memref<32x1xf32, #tpu.memory_space<vmem>>, %arg4: memref<32x1xf32, #tpu.memory_space<vmem>>, %arg5: memref<32x4xbf16, #tpu.memory_space<vmem>>, %arg6: memref<9x8x32xbf16, #tpu.memory_space<vmem>>, %arg7: memref<9x512xf32, #tpu.memory_space<vmem>>, %arg8: memref<12x512xf32, #tpu.memory_space<vmem>>) attributes {dimension_semantics = [], scalar_prefetch = 0 : i64, scratch_operands = 0 : i64, tpu.core_type = #tpu.core_type<tc>} {
    %c0 = arith.constant 0 : index
    %c0_0 = arith.constant 0 : index
    %0 = vector.load %arg0[%c0, %c0_0] : memref<4x512xf32, #tpu.memory_space<vmem>>, vector<4x512xf32>
    %cst = arith.constant dense<0.000000e+00> : vector<4xf32>
    %1 = vector.multi_reduction <add>, %0, %cst [1] : vector<4x512xf32> to vector<4xf32>
    %2 = vector.shape_cast %1 : vector<4xf32> to vector<4x1xf32>
    %cst_1 = arith.constant 0.001953125 : f32
    %3 = vector.broadcast %cst_1 : f32 to vector<4x1xf32>
    %4 = arith.mulf %2, %3 : vector<4x1xf32>
    %5 = arith.mulf %0, %0 : vector<4x512xf32>
    %cst_2 = arith.constant dense<0.000000e+00> : vector<4xf32>
    %6 = vector.multi_reduction <add>, %5, %cst_2 [1] : vector<4x512xf32> to vector<4xf32>
    %7 = vector.shape_cast %6 : vector<4xf32> to vector<4x1xf32>
    %cst_3 = arith.constant 0.001953125 : f32
    %8 = vector.broadcast %cst_3 : f32 to vector<4x1xf32>
    %9 = arith.mulf %7, %8 : vector<4x1xf32>
    %10 = arith.mulf %4, %4 : vector<4x1xf32>
    %11 = arith.subf %9, %10 : vector<4x1xf32>
    %c0_4 = arith.constant 0 : index
    %c0_5 = arith.constant 0 : index
    %12 = vector.load %arg1[%c0_4, %c0_5] : memref<4x1xf32, #tpu.memory_space<vmem>>, vector<4x1xf32>
    %cst_6 = arith.constant 9.99999974E-6 : f32
    %13 = vector.broadcast %cst_6 : f32 to vector<4x1xf32>
    %14 = arith.addf %11, %13 : vector<4x1xf32>
    %15 = math.rsqrt %14 : vector<4x1xf32>
    %16 = arith.mulf %12, %15 : vector<4x1xf32>
    %c0_7 = arith.constant 0 : index
    %c0_8 = arith.constant 0 : index
    %17 = vector.load %arg2[%c0_7, %c0_8] : memref<4x1xf32, #tpu.memory_space<vmem>>, vector<4x1xf32>
    %18 = arith.mulf %4, %16 : vector<4x1xf32>
    %19 = arith.subf %17, %18 : vector<4x1xf32>
    %20 = vector.broadcast %16 : vector<4x1xf32> to vector<4x512xf32>
    %21 = arith.mulf %0, %20 : vector<4x512xf32>
    %22 = vector.broadcast %19 : vector<4x1xf32> to vector<4x512xf32>
    %23 = arith.addf %21, %22 : vector<4x512xf32>
    %cst_9 = arith.constant 0.000000e+00 : f32
    %24 = vector.broadcast %cst_9 : f32 to vector<4x512xf32>
    %25 = arith.maximumf %23, %24 : vector<4x512xf32>
    %26 = arith.truncf %25 : vector<4x512xf32> to vector<4x512xbf16>
    %c0_10 = arith.constant 0 : index
    %c0_11 = arith.constant 0 : index
    %27 = vector.load %arg5[%c0_10, %c0_11] : memref<32x4xbf16, #tpu.memory_space<vmem>>, vector<32x4xbf16>
    %cst_12 = arith.constant dense<0.000000e+00> : vector<32x512xf32>
    %28 = tpu.matmul %27, %26, %cst_12 {dimension_numbers = #tpu.dot_dimension_numbers<[1], [0], [0], [1], [0, 0, 1, 1], [], []>} : vector<32x4xbf16>, vector<4x512xbf16>, vector<32x512xf32> -> vector<32x512xf32>
    %cst_13 = arith.constant dense<0.000000e+00> : vector<32xf32>
    %29 = vector.multi_reduction <add>, %28, %cst_13 [1] : vector<32x512xf32> to vector<32xf32>
    %30 = vector.shape_cast %29 : vector<32xf32> to vector<32x1xf32>
    %cst_14 = arith.constant 0.001953125 : f32
    %31 = vector.broadcast %cst_14 : f32 to vector<32x1xf32>
    %32 = arith.mulf %30, %31 : vector<32x1xf32>
    %33 = arith.mulf %28, %28 : vector<32x512xf32>
    %cst_15 = arith.constant dense<0.000000e+00> : vector<32xf32>
    %34 = vector.multi_reduction <add>, %33, %cst_15 [1] : vector<32x512xf32> to vector<32xf32>
    %35 = vector.shape_cast %34 : vector<32xf32> to vector<32x1xf32>
    %cst_16 = arith.constant 0.001953125 : f32
    %36 = vector.broadcast %cst_16 : f32 to vector<32x1xf32>
    %37 = arith.mulf %35, %36 : vector<32x1xf32>
    %38 = arith.mulf %32, %32 : vector<32x1xf32>
    %39 = arith.subf %37, %38 : vector<32x1xf32>
    %c0_17 = arith.constant 0 : index
    %c0_18 = arith.constant 0 : index
    %40 = vector.load %arg3[%c0_17, %c0_18] : memref<32x1xf32, #tpu.memory_space<vmem>>, vector<32x1xf32>
    %cst_19 = arith.constant 9.99999974E-6 : f32
    %41 = vector.broadcast %cst_19 : f32 to vector<32x1xf32>
    %42 = arith.addf %39, %41 : vector<32x1xf32>
    %43 = math.rsqrt %42 : vector<32x1xf32>
    %44 = arith.mulf %40, %43 : vector<32x1xf32>
    %c0_20 = arith.constant 0 : index
    %c0_21 = arith.constant 0 : index
    %45 = vector.load %arg4[%c0_20, %c0_21] : memref<32x1xf32, #tpu.memory_space<vmem>>, vector<32x1xf32>
    %46 = arith.mulf %32, %44 : vector<32x1xf32>
    %47 = arith.subf %45, %46 : vector<32x1xf32>
    %48 = vector.broadcast %44 : vector<32x1xf32> to vector<32x512xf32>
    %49 = arith.mulf %28, %48 : vector<32x512xf32>
    %50 = vector.broadcast %47 : vector<32x1xf32> to vector<32x512xf32>
    %51 = arith.addf %49, %50 : vector<32x512xf32>
    %cst_22 = arith.constant 0.000000e+00 : f32
    %52 = vector.broadcast %cst_22 : f32 to vector<32x512xf32>
    %53 = arith.maximumf %51, %52 : vector<32x512xf32>
    %54 = arith.truncf %53 : vector<32x512xf32> to vector<32x512xbf16>
    %c0_23 = arith.constant 0 : index
    %c0_24 = arith.constant 0 : index
    %55 = vector.load %arg7[%c0_23, %c0_24] : memref<9x512xf32, #tpu.memory_space<vmem>>, vector<9x512xf32>
    %cst_25 = arith.constant 0.000000e+00 : f32
    %56 = vector.broadcast %cst_25 : f32 to vector<8x512xf32>
    %c0_26 = arith.constant 0 : index
    %c0_27 = arith.constant 0 : index
    %c0_28 = arith.constant 0 : index
    %57 = vector.load %arg6[%c0_26, %c0_27, %c0_28] : memref<9x8x32xbf16, #tpu.memory_space<vmem>>, vector<1x8x32xbf16>
    %58 = vector.shape_cast %57 : vector<1x8x32xbf16> to vector<8x32xbf16>
    %cst_29 = arith.constant dense<0.000000e+00> : vector<8x512xf32>
    %59 = tpu.matmul %58, %54, %cst_29 {dimension_numbers = #tpu.dot_dimension_numbers<[1], [0], [0], [1], [0, 0, 1, 1], [], []>} : vector<8x32xbf16>, vector<32x512xbf16>, vector<8x512xf32> -> vector<8x512xf32>
    %c17_i32 = arith.constant 17 : i32
    %60 = tpu.dynamic_rotate %59 by %c17_i32 dim 1 : vector<8x512xf32>, i32 -> vector<8x512xf32>
    %61 = vector.extract_strided_slice %55 {offsets = [0, 0], sizes = [1, 512], strides = [1, 1]} : vector<9x512xf32> to vector<1x512xf32>
    %62 = vector.broadcast %61 : vector<1x512xf32> to vector<8x512xf32>
    %63 = arith.mulf %60, %62 : vector<8x512xf32>
    %64 = arith.addf %56, %63 : vector<8x512xf32>
    %c1 = arith.constant 1 : index
    %c0_30 = arith.constant 0 : index
    %c0_31 = arith.constant 0 : index
    %65 = vector.load %arg6[%c1, %c0_30, %c0_31] : memref<9x8x32xbf16, #tpu.memory_space<vmem>>, vector<1x8x32xbf16>
    %66 = vector.shape_cast %65 : vector<1x8x32xbf16> to vector<8x32xbf16>
    %cst_32 = arith.constant dense<0.000000e+00> : vector<8x512xf32>
    %67 = tpu.matmul %66, %54, %cst_32 {dimension_numbers = #tpu.dot_dimension_numbers<[1], [0], [0], [1], [0, 0, 1, 1], [], []>} : vector<8x32xbf16>, vector<32x512xbf16>, vector<8x512xf32> -> vector<8x512xf32>
    %c16_i32 = arith.constant 16 : i32
    %68 = tpu.dynamic_rotate %67 by %c16_i32 dim 1 : vector<8x512xf32>, i32 -> vector<8x512xf32>
    %69 = vector.extract_strided_slice %55 {offsets = [1, 0], sizes = [1, 512], strides = [1, 1]} : vector<9x512xf32> to vector<1x512xf32>
    %70 = vector.broadcast %69 : vector<1x512xf32> to vector<8x512xf32>
    %71 = arith.mulf %68, %70 : vector<8x512xf32>
    %72 = arith.addf %64, %71 : vector<8x512xf32>
    %c2 = arith.constant 2 : index
    %c0_33 = arith.constant 0 : index
    %c0_34 = arith.constant 0 : index
    %73 = vector.load %arg6[%c2, %c0_33, %c0_34] : memref<9x8x32xbf16, #tpu.memory_space<vmem>>, vector<1x8x32xbf16>
    %74 = vector.shape_cast %73 : vector<1x8x32xbf16> to vector<8x32xbf16>
    %cst_35 = arith.constant dense<0.000000e+00> : vector<8x512xf32>
    %75 = tpu.matmul %74, %54, %cst_35 {dimension_numbers = #tpu.dot_dimension_numbers<[1], [0], [0], [1], [0, 0, 1, 1], [], []>} : vector<8x32xbf16>, vector<32x512xbf16>, vector<8x512xf32> -> vector<8x512xf32>
    %c15_i32 = arith.constant 15 : i32
    %76 = tpu.dynamic_rotate %75 by %c15_i32 dim 1 : vector<8x512xf32>, i32 -> vector<8x512xf32>
    %77 = vector.extract_strided_slice %55 {offsets = [2, 0], sizes = [1, 512], strides = [1, 1]} : vector<9x512xf32> to vector<1x512xf32>
    %78 = vector.broadcast %77 : vector<1x512xf32> to vector<8x512xf32>
    %79 = arith.mulf %76, %78 : vector<8x512xf32>
    %80 = arith.addf %72, %79 : vector<8x512xf32>
    %c3 = arith.constant 3 : index
    %c0_36 = arith.constant 0 : index
    %c0_37 = arith.constant 0 : index
    %81 = vector.load %arg6[%c3, %c0_36, %c0_37] : memref<9x8x32xbf16, #tpu.memory_space<vmem>>, vector<1x8x32xbf16>
    %82 = vector.shape_cast %81 : vector<1x8x32xbf16> to vector<8x32xbf16>
    %cst_38 = arith.constant dense<0.000000e+00> : vector<8x512xf32>
    %83 = tpu.matmul %82, %54, %cst_38 {dimension_numbers = #tpu.dot_dimension_numbers<[1], [0], [0], [1], [0, 0, 1, 1], [], []>} : vector<8x32xbf16>, vector<32x512xbf16>, vector<8x512xf32> -> vector<8x512xf32>
    %c1_i32 = arith.constant 1 : i32
    %84 = tpu.dynamic_rotate %83 by %c1_i32 dim 1 : vector<8x512xf32>, i32 -> vector<8x512xf32>
    %85 = vector.extract_strided_slice %55 {offsets = [3, 0], sizes = [1, 512], strides = [1, 1]} : vector<9x512xf32> to vector<1x512xf32>
    %86 = vector.broadcast %85 : vector<1x512xf32> to vector<8x512xf32>
    %87 = arith.mulf %84, %86 : vector<8x512xf32>
    %88 = arith.addf %80, %87 : vector<8x512xf32>
    %c4 = arith.constant 4 : index
    %c0_39 = arith.constant 0 : index
    %c0_40 = arith.constant 0 : index
    %89 = vector.load %arg6[%c4, %c0_39, %c0_40] : memref<9x8x32xbf16, #tpu.memory_space<vmem>>, vector<1x8x32xbf16>
    %90 = vector.shape_cast %89 : vector<1x8x32xbf16> to vector<8x32xbf16>
    %cst_41 = arith.constant dense<0.000000e+00> : vector<8x512xf32>
    %91 = tpu.matmul %90, %54, %cst_41 {dimension_numbers = #tpu.dot_dimension_numbers<[1], [0], [0], [1], [0, 0, 1, 1], [], []>} : vector<8x32xbf16>, vector<32x512xbf16>, vector<8x512xf32> -> vector<8x512xf32>
    %92 = vector.extract_strided_slice %55 {offsets = [4, 0], sizes = [1, 512], strides = [1, 1]} : vector<9x512xf32> to vector<1x512xf32>
    %93 = vector.broadcast %92 : vector<1x512xf32> to vector<8x512xf32>
    %94 = arith.mulf %91, %93 : vector<8x512xf32>
    %95 = arith.addf %88, %94 : vector<8x512xf32>
    %c5 = arith.constant 5 : index
    %c0_42 = arith.constant 0 : index
    %c0_43 = arith.constant 0 : index
    %96 = vector.load %arg6[%c5, %c0_42, %c0_43] : memref<9x8x32xbf16, #tpu.memory_space<vmem>>, vector<1x8x32xbf16>
    %97 = vector.shape_cast %96 : vector<1x8x32xbf16> to vector<8x32xbf16>
    %cst_44 = arith.constant dense<0.000000e+00> : vector<8x512xf32>
    %98 = tpu.matmul %97, %54, %cst_44 {dimension_numbers = #tpu.dot_dimension_numbers<[1], [0], [0], [1], [0, 0, 1, 1], [], []>} : vector<8x32xbf16>, vector<32x512xbf16>, vector<8x512xf32> -> vector<8x512xf32>
    %c511_i32 = arith.constant 511 : i32
    %99 = tpu.dynamic_rotate %98 by %c511_i32 dim 1 : vector<8x512xf32>, i32 -> vector<8x512xf32>
    %100 = vector.extract_strided_slice %55 {offsets = [5, 0], sizes = [1, 512], strides = [1, 1]} : vector<9x512xf32> to vector<1x512xf32>
    %101 = vector.broadcast %100 : vector<1x512xf32> to vector<8x512xf32>
    %102 = arith.mulf %99, %101 : vector<8x512xf32>
    %103 = arith.addf %95, %102 : vector<8x512xf32>
    %c6 = arith.constant 6 : index
    %c0_45 = arith.constant 0 : index
    %c0_46 = arith.constant 0 : index
    %104 = vector.load %arg6[%c6, %c0_45, %c0_46] : memref<9x8x32xbf16, #tpu.memory_space<vmem>>, vector<1x8x32xbf16>
    %105 = vector.shape_cast %104 : vector<1x8x32xbf16> to vector<8x32xbf16>
    %cst_47 = arith.constant dense<0.000000e+00> : vector<8x512xf32>
    %106 = tpu.matmul %105, %54, %cst_47 {dimension_numbers = #tpu.dot_dimension_numbers<[1], [0], [0], [1], [0, 0, 1, 1], [], []>} : vector<8x32xbf16>, vector<32x512xbf16>, vector<8x512xf32> -> vector<8x512xf32>
    %c497_i32 = arith.constant 497 : i32
    %107 = tpu.dynamic_rotate %106 by %c497_i32 dim 1 : vector<8x512xf32>, i32 -> vector<8x512xf32>
    %108 = vector.extract_strided_slice %55 {offsets = [6, 0], sizes = [1, 512], strides = [1, 1]} : vector<9x512xf32> to vector<1x512xf32>
    %109 = vector.broadcast %108 : vector<1x512xf32> to vector<8x512xf32>
    %110 = arith.mulf %107, %109 : vector<8x512xf32>
    %111 = arith.addf %103, %110 : vector<8x512xf32>
    %c7 = arith.constant 7 : index
    %c0_48 = arith.constant 0 : index
    %c0_49 = arith.constant 0 : index
    %112 = vector.load %arg6[%c7, %c0_48, %c0_49] : memref<9x8x32xbf16, #tpu.memory_space<vmem>>, vector<1x8x32xbf16>
    %113 = vector.shape_cast %112 : vector<1x8x32xbf16> to vector<8x32xbf16>
    %cst_50 = arith.constant dense<0.000000e+00> : vector<8x512xf32>
    %114 = tpu.matmul %113, %54, %cst_50 {dimension_numbers = #tpu.dot_dimension_numbers<[1], [0], [0], [1], [0, 0, 1, 1], [], []>} : vector<8x32xbf16>, vector<32x512xbf16>, vector<8x512xf32> -> vector<8x512xf32>
    %c496_i32 = arith.constant 496 : i32
    %115 = tpu.dynamic_rotate %114 by %c496_i32 dim 1 : vector<8x512xf32>, i32 -> vector<8x512xf32>
    %116 = vector.extract_strided_slice %55 {offsets = [7, 0], sizes = [1, 512], strides = [1, 1]} : vector<9x512xf32> to vector<1x512xf32>
    %117 = vector.broadcast %116 : vector<1x512xf32> to vector<8x512xf32>
    %118 = arith.mulf %115, %117 : vector<8x512xf32>
    %119 = arith.addf %111, %118 : vector<8x512xf32>
    %c8 = arith.constant 8 : index
    %c0_51 = arith.constant 0 : index
    %c0_52 = arith.constant 0 : index
    %120 = vector.load %arg6[%c8, %c0_51, %c0_52] : memref<9x8x32xbf16, #tpu.memory_space<vmem>>, vector<1x8x32xbf16>
    %121 = vector.shape_cast %120 : vector<1x8x32xbf16> to vector<8x32xbf16>
    %cst_53 = arith.constant dense<0.000000e+00> : vector<8x512xf32>
    %122 = tpu.matmul %121, %54, %cst_53 {dimension_numbers = #tpu.dot_dimension_numbers<[1], [0], [0], [1], [0, 0, 1, 1], [], []>} : vector<8x32xbf16>, vector<32x512xbf16>, vector<8x512xf32> -> vector<8x512xf32>
    %c495_i32 = arith.constant 495 : i32
    %123 = tpu.dynamic_rotate %122 by %c495_i32 dim 1 : vector<8x512xf32>, i32 -> vector<8x512xf32>
    %124 = vector.extract_strided_slice %55 {offsets = [8, 0], sizes = [1, 512], strides = [1, 1]} : vector<9x512xf32> to vector<1x512xf32>
    %125 = vector.broadcast %124 : vector<1x512xf32> to vector<8x512xf32>
    %126 = arith.mulf %123, %125 : vector<8x512xf32>
    %127 = arith.addf %119, %126 : vector<8x512xf32>
    %128 = tpu.concatenate %0, %127 in 0 : vector<4x512xf32>, vector<8x512xf32> -> vector<12x512xf32>
    %c0_54 = arith.constant 0 : index
    %c0_55 = arith.constant 0 : index
    %129 = vector.load %arg8[%c0_54, %c0_55] : memref<12x512xf32, #tpu.memory_space<vmem>>, vector<12x512xf32>
    tpu.vector_store %arg8[%c0_54, %c0_55], %128 {strides = array<i32>} : memref<12x512xf32, #tpu.memory_space<vmem>>, vector<12x512xf32>,
    return
  }
}

</mosaic_0001>

<bundles_post_ra>
// kernel: densenet_block_forward.1
= control target key start
LH: loop header
LB: loop body
LE: loop exit
PB: predicated region body
PF: predicated region fallthrough
CT: control target
= control target key end

     0   :  { %vm45_vm0 = vcmask 1043456   ;;  %v1345_v26 = vmov 0   ;;  %v1346_v46 = vmov 839922192   ;;  %vm161_vm4 = vcmask 1041408   ;;  %s1347_s19 = smov 17   ;;  %s1930_s0 = inlined_call_operand.vmem [shape: f32[4,512], index: 0, kind: input, shape index: {}]   ;;  %s1931_s1 = inlined_call_operand.vmem [shape: f32[4,1], index: 1, kind: input, shape index: {}]   ;;  %s1932_s2 = inlined_call_operand.vmem [shape: f32[4,1], index: 2, kind: input, shape index: {}]   ;;  %s1933_s5 = inlined_call_operand.vmem [shape: bf16[32,4], index: 5, kind: input, shape index: {}]   ;;  %s1934_s3 = inlined_call_operand.vmem [shape: f32[32,1], index: 3, kind: input, shape index: {}]   ;;  %s1935_s4 = inlined_call_operand.vmem [shape: f32[32,1], index: 4, kind: input, shape index: {}]   ;;  %s1936_s6 = inlined_call_operand.vmem [shape: bf16[9,8,32], index: 6, kind: input, shape index: {}]   ;;  %s1937_s7 = inlined_call_operand.vmem [shape: f32[9,512], index: 7, kind: input, shape index: {}]   ;;  %s1938_s8 = inlined_call_operand.vmem [shape: f32[12,512], index: 8, kind: output, shape index: {}]  }
   0x1   :  { %v1403_v0 = vld [vmem:[%s1930_s0] sm:$0xff]  ;;  %v1408_v1 = vld [vmem:[%s1930_s0 + $0x8] sm:$0xff]  ;;  %1328 = vset.pattern.permute.xlu1 %v1345_v26  ;;  %1329 = vset.pattern.permute.xlu2 %v1345_v26  ;;  %v104_v47 = vunpack.c.l.s4 %v1346_v46  ;;  %vm154_vm5 = vcmask 31744   ;;  %s1349_s20 = smov 15   ;;  %s1350_s21 = smov 1  }
   0x2   :  { %34 = vst [vmem:[#allocation1] ss:$2 sm:$0xff] %v1403_v0  ;;  %v56_v2 = vmul.f32 %v1403_v0, %v1403_v0  ;;  %v57_v3 = vmul.f32 %v1408_v1, %v1408_v1  ;;  %1330 = vset.pattern.permute.xlu0 %v1345_v26  ;;  %v83_v39 = vld [vmem:[%s1931_s1] sm:$0xf]  ;;  %s1351_s22 = smov 127   ;;  %s1352_s23 = smov 113  }
   0x3   :  { %36 = vst [vmem:[#allocation1 + $0x10] ss:$2 sm:$0xff] %v1408_v1  ;;  %v96_v44 = vld [vmem:[%s1932_s2] sm:$0xf]  ;;  %v105_v49 = vunpack.c.0.s8 %v104_v47  ;;  %s1353_s24 = smov 112   ;;  %s1354_s25 = smov 111  }
   0x9   :  { %v37_v4 = vld.sshfl [vmem:[#allocation1] sm:$0xff pattern:$0x75316420]  ;;  %v38_v5 = vld.sshfl [vmem:[#allocation1 + $0x8] sm:$0xff pattern:$0x75316420] }
   0xa   :  { %v39_v6 = vld.sshfl [vmem:[#allocation1 + $0x10] sm:$0xff pattern:$0x75316420]  ;;  %v40_v7 = vld.sshfl [vmem:[#allocation1 + $0x18] sm:$0xff pattern:$0x75316420] }
   0xb   :  { %v46_v8 = vsel %vm45_vm0, %v37_v4, 0.0  ;;  %v47_v9 = vsel %vm45_vm0, %v38_v5, 0.0  ;;  %v49_v10 = vsel %vm45_vm0, %v39_v6, 0.0  ;;  %60 = vst [vmem:[#allocation1] ss:$2 sm:$0xff] %v56_v2  ;;  %v51_v12 = vsel %vm45_vm0, %v40_v7, 0.0 }
   0xc   :  { %v48_v11 = vadd.f32 %v47_v9, %v46_v8  ;;  %62 = vst [vmem:[#allocation1 + $0x10] ss:$2 sm:$0xff] %v57_v3  ;;  %v1316_v7 = vld [vmem:[%s1933_s5] sm:$0xff] }
   0xe   :  { %v50_v13 = vadd.f32 %v49_v10, %v48_v11 }
  0x10   :  { %v52_v14 = vadd.f32 %v51_v12, %v50_v13 }
  0x12   :  { %53 = vadd.xlane.f32.xlu0 %v52_v14  ;;  %v63_v15 = vld.sshfl [vmem:[#allocation1] sm:$0xff pattern:$0x75316420]  ;;  %v64_v16 = vld.sshfl [vmem:[#allocation1 + $0x8] sm:$0xff pattern:$0x75316420] }
  0x13   :  { %v65_v17 = vld.sshfl [vmem:[#allocation1 + $0x10] sm:$0xff pattern:$0x75316420]  ;;  %v66_v18 = vld.sshfl [vmem:[#allocation1 + $0x18] sm:$0xff pattern:$0x75316420] }
  0x14   :  { %v71_v19 = vsel %vm45_vm0, %v63_v15, 0.0  ;;  %v72_v20 = vsel %vm45_vm0, %v64_v16, 0.0  ;;  %v74_v21 = vsel %vm45_vm0, %v65_v17, 0.0  ;;  %v76_v23 = vsel %vm45_vm0, %v66_v18, 0.0 }
  0x15   :  { %v73_v22 = vadd.f32 %v72_v20, %v71_v19 }
  0x17   :  { %v75_v24 = vadd.f32 %v74_v21, %v73_v22 }
  0x19   :  { %v77_v25 = vadd.f32 %v76_v23, %v75_v24 }
  0x1b   :  { %78 = vadd.xlane.f32.xlu0 %v77_v25 }
  0x85   :  { %v54_v27 = vpop.xlane.xlu0 %53 }
  0x86   :  { %v55_v28 = vmul.f32 0.001953125, %v54_v27 }
  0x88   :  { %v81_v30 = vmul.f32 %v55_v28, %v55_v28 }
  0x8e   :  { %v79_v29 = vpop.xlane.xlu0 %78 }
  0x8f   :  { %v80_v31 = vmul.f32 0.001953125, %v79_v29 }
  0x91   :  { %v82_v32 = vsub.f32 %v80_v31, %v81_v30 }
  0x93   :  { %v84_v33 = vadd.f32 1e-05, %v82_v32 }
  0x95   :  { %1335 = vrsqrt.f32 %v84_v33  ;;  %vm91_vm2 = vweird.f32 %v84_v33 }
  0x9b   :  { %v1336_v34 = vpop.eup %1335 }
  0x9c   :  { %v86_v35 = vmul.f32 %v1336_v34, %v84_v33  ;;  %vm92_vm1 = vweird.f32 %v1336_v34 }
  0x9d   :  { %vm93_vm3 = vmor %vm91_vm2, %vm92_vm1 }
  0x9e   :  { %v87_v36 = vmul.f32 %v1336_v34, %v86_v35 }
  0xa0   :  { %v88_v37 = vmul.f32 0.5, %v87_v36 }
  0xa2   :  { %v89_v38 = vsub.f32 1.5, %v88_v37 }
  0xa4   :  { %v90_v40 = vmul.f32 %v1336_v34, %v89_v38 }
  0xa6   :  { %v94_v41 = vsel %vm93_vm3, %v1336_v34, %v90_v40  ;;  %vm491_vm3 = vcmask 261120  }
  0xa7   :  { %v95_v42 = vmul.f32 %v94_v41, %v83_v39 }
  0xa9   :  { %101 = vperm.xlu1 %1328, %v95_v42   ;;  %v97_v43 = vmul.f32 %v95_v42, %v55_v28 }
  0xab   :  { %v98_v45 = vsub.f32 %v96_v44, %v97_v43 }
  0xb1   :  { %112 = vperm.xlu1 %1328, %v98_v45  }
 0x11b   :  { %v102_v48 = vpop.permute.xlu1 %101 }
 0x11c   :  { %v106_v50 = vperm.slane %v102_v48, %v105_v49 }
 0x11e   :  { %v108_v52 = vmul.f32 %v106_v50, %v1403_v0  ;;  %v109_v53 = vmul.f32 %v106_v50, %v1408_v1 }
 0x123   :  { %v113_v51 = vpop.permute.xlu1 %112 }
 0x124   :  { %v117_v54 = vperm.slane %v113_v51, %v105_v49 }
 0x126   :  { %v119_v55 = vadd.f32 %v117_v54, %v108_v52  ;;  %v120_v56 = vadd.f32 %v117_v54, %v109_v53 }
 0x128   :  { %v121_v57 = vmax.f32 %v119_v55, 0.0  ;;  %v122_v58 = vmax.f32 %v120_v56, 0.0 }
 0x12a   :  { %125 = vst [vmem:[#allocation1] ss:$2 sm:$0xff] %v121_v57 }
 0x12b   :  { %127 = vst [vmem:[#allocation1 + $0x10] ss:$2 sm:$0xff] %v122_v58 }
 0x131   :  { %v128_v59 = vld.sshfl [vmem:[#allocation1] sm:$0xff pattern:$0x75316420]  ;;  %v129_v60 = vld.sshfl [vmem:[#allocation1 + $0x8] sm:$0xff pattern:$0x75316420] }
 0x132   :  { %v136_v61 = vpack.c.bf16 %v128_v59, %v128_v59  ;;  %v137_v62 = vpack.c.bf16 %v129_v60, %v129_v60  ;;  %1217 = vst [vmem:[#allocation1] ss:$2 sm:$0xff] %v1403_v0  ;;  %v130_v63 = vld.sshfl [vmem:[#allocation1 + $0x10] sm:$0xff pattern:$0x75316420] }
 0x133   :  { %v138_v2 = vpack.c.bf16 %v130_v63, %v130_v63  ;;  %v131_v3 = vld.sshfl [vmem:[#allocation1 + $0x18] sm:$0xff pattern:$0x75316420] }
 0x134   :  { %v163_v4 = vsel %vm161_vm4, %v136_v61, 0  ;;  %v166_v5 = vsel %vm161_vm4, %v137_v62, 0  ;;  %v139_v6 = vpack.c.bf16 %v131_v3, %v131_v3  ;;  %1219 = vst [vmem:[#allocation1 + $0x10] ss:$2 sm:$0xff] %v1408_v1  ;;  %v1317_v1 = vld [vmem:[%s1933_s5 + $0x8] sm:$0xff] }
 0x135   :  { %181 = vmatpush.bf16.msra.mxu0 %v163_v4  ;;  %200 = vmatpush.bf16.msra.mxu1 %v166_v5  ;;  %v169_v8 = vsel %vm161_vm4, %v138_v2, 0 }
 0x136   :  { %219 = vmatpush.bf16.msra.mxu2 %v169_v8  ;;  %v172_v0 = vsel %vm161_vm4, %v139_v6, 0 }
 0x137   :  { %238 = vmatpush.bf16.msra.mxu3 %v172_v0 }
 0x138   :  { %1264 = vmatmul.msk.bf16.vlgmr.msra.gmra.mxu0 %vm154_vm5, %v1316_v7  ;;  %1266 = vmatmul.msk.bf16.vlgmr.msra.gmra.mxu1 %vm154_vm5, %v1316_v7 }
 0x139   :  { %1268 = vmatmul.msk.bf16.vlgmr.msra.gmra.mxu2 %vm154_vm5, %v1316_v7 }
 0x13a   :  { %1270 = vmatmul.msk.bf16.vlgmr.msra.gmra.mxu3 %vm154_vm5, %v1316_v7 }
 0x148   :  { %1265 = vmatmul.msk.bf16.gmra.mxu0 %vm154_vm5, %v1317_v1  ;;  %1267 = vmatmul.msk.bf16.gmra.mxu1 %vm154_vm5, %v1317_v1 }
 0x149   :  { %1269 = vmatmul.msk.bf16.gmra.mxu2 %vm154_vm5, %v1317_v1 }
 0x14a   :  { %1271 = vmatmul.msk.bf16.gmra.mxu3 %vm154_vm5, %v1317_v1 }
 0x1b5   :  { %v1444_v9 = vpop.f32.mrf.mxu0  ;;  %v1446_v10 = vpop.f32.mrf.mxu1 }
 0x1b6   :  { %v250_v43 = vadd.f32 %v1446_v10, %v1444_v9  ;;  %v274_v52 = vmul.f32 %v1444_v9, %v1444_v9  ;;  %v275_v53 = vmul.f32 %v1446_v10, %v1446_v10 }
 0x1b8   :  { %v290_v60 = vadd.f32 %v275_v53, %v274_v52 }
 0x1bc   :  { %v1448_v11 = vpop.f32.mrf.mxu2 }
 0x1bd   :  { %v1450_v12 = vpop.f32.mrf.mxu3  ;;  %v1452_v13 = vpop.f32.mrf.mxu0  ;;  %v251_v54 = vadd.f32 %v250_v43, %v1448_v11  ;;  %v276_v57 = vmul.f32 %v1448_v11, %v1448_v11 }
 0x1be   :  { %v1454_v14 = vpop.f32.mrf.mxu1  ;;  %v278_v44 = vmul.f32 %v1452_v13, %v1452_v13  ;;  %v277_v62 = vmul.f32 %v1450_v12, %v1450_v12 }
 0x1bf   :  { %v255_v35 = vadd.f32 %v1454_v14, %v1452_v13  ;;  %v279_v45 = vmul.f32 %v1454_v14, %v1454_v14  ;;  %v252_v58 = vadd.f32 %v251_v54, %v1450_v12  ;;  %v291_v63 = vadd.f32 %v290_v60, %v276_v57 }
 0x1c1   :  { %v295_v55 = vadd.f32 %v279_v45, %v278_v44  ;;  %v292_v2 = vadd.f32 %v291_v63, %v277_v62  ;;  %v325_v62 = vld [vmem:[%s1934_s3 + $0x18] sm:$0xff] }
 0x1c4   :  { %v1456_v15 = vpop.f32.mrf.mxu2 }
 0x1c5   :  { %v1458_v16 = vpop.f32.mrf.mxu3  ;;  %v1460_v17 = vpop.f32.mrf.mxu0  ;;  %v256_v41 = vadd.f32 %v255_v35, %v1456_v15  ;;  %v280_v49 = vmul.f32 %v1456_v15, %v1456_v15 }
 0x1c6   :  { %v1462_v18 = vpop.f32.mrf.mxu1  ;;  %v282_v19 = vmul.f32 %v1460_v17, %v1460_v17  ;;  %v281_v59 = vmul.f32 %v1458_v16, %v1458_v16 }
 0x1c7   :  { %v283_v20 = vmul.f32 %v1462_v18, %v1462_v18  ;;  %v260_v21 = vadd.f32 %v1462_v18, %v1460_v17  ;;  %v257_v50 = vadd.f32 %v256_v41, %v1458_v16  ;;  %v296_v56 = vadd.f32 %v295_v55, %v280_v49 }
 0x1c9   :  { %v300_v22 = vadd.f32 %v283_v20, %v282_v19  ;;  %v297_v61 = vadd.f32 %v296_v56, %v281_v59 }
 0x1cc   :  { %v1470_v23 = vpop.f32.mrf.mxu2 }
 0x1cd   :  { %v284_v24 = vmul.f32 %v1470_v23, %v1470_v23  ;;  %v1474_v25 = vpop.f32.mrf.mxu3  ;;  %v261_v26 = vadd.f32 %v260_v21, %v1470_v23  ;;  %v1477_v27 = vpop.f32.mrf.mxu0 }
 0x1ce   :  { %v1479_v28 = vpop.f32.mrf.mxu1  ;;  %v285_v29 = vmul.f32 %v1474_v25, %v1474_v25  ;;  %v286_v32 = vmul.f32 %v1477_v27, %v1477_v27 }
 0x1cf   :  { %v262_v30 = vadd.f32 %v261_v26, %v1474_v25  ;;  %v301_v31 = vadd.f32 %v300_v22, %v284_v24  ;;  %v287_v33 = vmul.f32 %v1479_v28, %v1479_v28  ;;  %v265_v36 = vadd.f32 %v1479_v28, %v1477_v27 }
 0x1d1   :  { %263 = vadd.xlane.f32.xlu2 %v262_v30  ;;  %v302_v34 = vadd.f32 %v301_v31, %v285_v29  ;;  %v305_v42 = vadd.f32 %v287_v33, %v286_v32 }
 0x1d3   :  { %303 = vadd.xlane.f32.xlu0 %v302_v34 }
 0x1d4   :  { %v1492_v37 = vpop.f32.mrf.mxu2 }
 0x1d5   :  { %v288_v38 = vmul.f32 %v1492_v37, %v1492_v37  ;;  %v1496_v39 = vpop.f32.mrf.mxu3  ;;  %v266_v40 = vadd.f32 %v265_v36, %v1492_v37 }
 0x1d6   :  { %v289_v47 = vmul.f32 %v1496_v39, %v1496_v39 }
 0x1d7   :  { %v267_v46 = vadd.f32 %v266_v40, %v1496_v39  ;;  %v306_v48 = vadd.f32 %v305_v42, %v288_v38 }
 0x1d9   :  { %268 = vadd.xlane.f32.xlu2 %v267_v46  ;;  %v307_v51 = vadd.f32 %v306_v48, %v289_v47  ;;  %v324_v48 = vld [vmem:[%s1934_s3 + $0x10] sm:$0xff] }
 0x1db   :  { %258 = vadd.xlane.f32.xlu0 %v257_v50  ;;  %308 = vadd.xlane.f32.xlu1 %v307_v51 }
 0x1e1   :  { %253 = vadd.xlane.f32.xlu2 %v252_v58 }
 0x1e3   :  { %298 = vadd.xlane.f32.xlu0 %v297_v61  ;;  %v376_v61 = vld [vmem:[%s1935_s4 + $0x10] sm:$0xff] }
 0x1e9   :  { %293 = vadd.xlane.f32.xlu2 %v292_v2 }
 0x244   :  { %v264_v3 = vpop.xlane.xlu2 %263 }
 0x245   :  { %v272_v4 = vmul.f32 0.001953125, %v264_v3 }
 0x246   :  { %v304_v5 = vpop.xlane.xlu0 %303 }
 0x247   :  { %v316_v6 = vmul.f32 %v272_v4, %v272_v4  ;;  %v312_v7 = vmul.f32 0.001953125, %v304_v5 }
 0x249   :  { %v320_v8 = vsub.f32 %v312_v7, %v316_v6  ;;  %v377_v7 = vld [vmem:[%s1935_s4 + $0x18] sm:$0xff] }
 0x24b   :  { %v328_v0 = vadd.f32 1e-05, %v320_v8 }
 0x24c   :  { %v269_v1 = vpop.xlane.xlu2 %268 }
 0x24d   :  { %1337 = vrsqrt.f32 %v328_v0  ;;  %v273_v19 = vmul.f32 0.001953125, %v269_v1  ;;  %vm356_vm7 = vweird.f32 %v328_v0 }
 0x24e   :  { %v259_v20 = vpop.xlane.xlu0 %258  ;;  %v309_v21 = vpop.xlane.xlu1 %308 }
 0x24f   :  { %v317_v22 = vmul.f32 %v273_v19, %v273_v19  ;;  %v313_v24 = vmul.f32 0.001953125, %v309_v21  ;;  %v1524_v30 = vmul.f32 0.001953125, %v259_v20 }
 0x251   :  { %v321_v26 = vsub.f32 %v313_v24, %v317_v22  ;;  %v315_v36 = vmul.f32 %v1524_v30, %v1524_v30 }
 0x253   :  { %v1338_v29 = vpop.eup %1337  ;;  %v329_v31 = vadd.f32 1e-05, %v321_v26 }
 0x254   :  { %v351_v32 = vmul.f32 %v1338_v29, %v328_v0  ;;  %v254_v33 = vpop.xlane.xlu2 %253  ;;  %vm357_vm6 = vweird.f32 %v1338_v29 }
 0x255   :  { %1339 = vrsqrt.f32 %v329_v31  ;;  %v1528_v41 = vmul.f32 0.001953125, %v254_v33  ;;  %vm358_vm8 = vmor %vm356_vm7, %vm357_vm6  ;;  %vm366_vm10 = vweird.f32 %v329_v31 }
 0x256   :  { %v352_v34 = vmul.f32 %v1338_v29, %v351_v32  ;;  %v299_v35 = vpop.xlane.xlu0 %298 }
 0x257   :  { %v311_v38 = vmul.f32 0.001953125, %v299_v35  ;;  %v314_v50 = vmul.f32 %v1528_v41, %v1528_v41 }
 0x258   :  { %v353_v40 = vmul.f32 0.5, %v352_v34 }
 0x259   :  { %v319_v42 = vsub.f32 %v311_v38, %v315_v36 }
 0x25a   :  { %v354_v43 = vsub.f32 1.5, %v353_v40  ;;  %v323_v40 = vld [vmem:[%s1934_s3 + $0x8] sm:$0xff] }
 0x25b   :  { %v1340_v44 = vpop.eup %1339  ;;  %v327_v45 = vadd.f32 1e-05, %v319_v42 }
 0x25c   :  { %v361_v46 = vmul.f32 %v1340_v44, %v329_v31  ;;  %v294_v47 = vpop.xlane.xlu2 %293  ;;  %v355_v49 = vmul.f32 %v1338_v29, %v354_v43  ;;  %vm367_vm9 = vweird.f32 %v1340_v44  ;;  %v322_v31 = vld [vmem:[%s1934_s3] sm:$0xff] }
 0x25d   :  { %1341 = vrsqrt.f32 %v327_v45  ;;  %v310_v51 = vmul.f32 0.001953125, %v294_v47  ;;  %vm368_vm11 = vmor %vm366_vm10, %vm367_vm9  ;;  %vm346_vm1 = vweird.f32 %v327_v45 }
 0x25e   :  { %v362_v52 = vmul.f32 %v1340_v44, %v361_v46  ;;  %v359_v53 = vsel %vm358_vm8, %v1338_v29, %v355_v49  ;;  %v375_v46 = vld [vmem:[%s1935_s4 + $0x8] sm:$0xff] }
 0x25f   :  { %v318_v54 = vsub.f32 %v310_v51, %v314_v50  ;;  %v372_v55 = vmul.f32 %v359_v53, %v324_v48 }
 0x260   :  { %v363_v56 = vmul.f32 0.5, %v362_v52 }
 0x261   :  { %v326_v57 = vadd.f32 1e-05, %v318_v54  ;;  %398 = vperm.xlu2 %1329, %v372_v55   ;;  %v380_v60 = vmul.f32 %v372_v55, %v272_v4 }
 0x262   :  { %v364_v58 = vsub.f32 1.5, %v363_v56 }
 0x263   :  { %v1342_v59 = vpop.eup %1341  ;;  %1343 = vrsqrt.f32 %v326_v57  ;;  %v384_v5 = vsub.f32 %v376_v61, %v380_v60  ;;  %vm336_vm13 = vweird.f32 %v326_v57 }
 0x264   :  { %v365_v63 = vmul.f32 %v1340_v44, %v364_v58  ;;  %v341_v2 = vmul.f32 %v1342_v59, %v327_v45  ;;  %vm347_vm15 = vweird.f32 %v1342_v59 }
 0x265   :  { %vm348_vm2 = vmor %vm346_vm1, %vm347_vm15 }
 0x266   :  { %v369_v3 = vsel %vm368_vm11, %v1340_v44, %v365_v63  ;;  %v342_v0 = vmul.f32 %v1342_v59, %v341_v2 }
 0x267   :  { %v373_v6 = vmul.f32 %v369_v3, %v325_v62 }
 0x268   :  { %v343_v22 = vmul.f32 0.5, %v342_v0 }
 0x269   :  { %v1344_v4 = vpop.eup %1343  ;;  %434 = vperm.xlu2 %1329, %v384_v5   ;;  %403 = vperm.xlu0 %1330, %v373_v6   ;;  %v381_v8 = vmul.f32 %v373_v6, %v273_v19  ;;  %v374_v19 = vld [vmem:[%s1935_s4] sm:$0xff] }
 0x26a   :  { %v331_v1 = vmul.f32 %v1344_v4, %v326_v57  ;;  %vm337_vm12 = vweird.f32 %v1344_v4  ;;  %v344_v29 = vsub.f32 1.5, %v343_v22 }
 0x26b   :  { %v385_v20 = vsub.f32 %v377_v7, %v381_v8  ;;  %vm338_vm14 = vmor %vm336_vm13, %vm337_vm12 }
 0x26c   :  { %v332_v21 = vmul.f32 %v1344_v4, %v331_v1  ;;  %v345_v35 = vmul.f32 %v1342_v59, %v344_v29 }
 0x26d   :  { %439 = vperm.xlu1 %1328, %v385_v20  }
 0x26e   :  { %v333_v24 = vmul.f32 0.5, %v332_v21  ;;  %v349_v42 = vsel %vm348_vm2, %v1342_v59, %v345_v35 }
 0x26f   :  { %v371_v43 = vmul.f32 %v349_v42, %v323_v40 }
 0x270   :  { %v334_v26 = vsub.f32 1.5, %v333_v24 }
 0x271   :  { %v379_v44 = vmul.f32 %v371_v43, %v1524_v30 }
 0x272   :  { %v335_v32 = vmul.f32 %v1344_v4, %v334_v26 }
 0x273   :  { %v383_v47 = vsub.f32 %v375_v46, %v379_v44 }
 0x274   :  { %v339_v33 = vsel %vm338_vm14, %v1344_v4, %v335_v32 }
 0x275   :  { %v370_v34 = vmul.f32 %v339_v33, %v322_v31 }
 0x277   :  { %388 = vperm.xlu2 %1329, %v370_v34   ;;  %v378_v36 = vmul.f32 %v370_v34, %v1528_v41 }
 0x279   :  { %v382_v38 = vsub.f32 %v374_v19, %v378_v36 }
 0x27b   :  { %424 = vperm.xlu0 %1330, %v382_v38  }
 0x27f   :  { %393 = vperm.xlu2 %1329, %v371_v43  }
 0x287   :  { %429 = vperm.xlu2 %1329, %v383_v47  }
 0x2bb   :  { %v399_v41 = vpop.permute.xlu2 %398 }
 0x2bc   :  { %v414_v49 = vmul.f32 %v399_v41, %v1460_v17  ;;  %v415_v50 = vmul.f32 %v399_v41, %v1462_v18  ;;  %v416_v51 = vmul.f32 %v399_v41, %v1470_v23  ;;  %v417_v52 = vmul.f32 %v399_v41, %v1474_v25  ;;  %v490_v41 = vld [vmem:[%s1936_s6] sm:$0xf] }
 0x2c3   :  { %v435_v45 = vpop.permute.xlu2 %434 }
 0x2c4   :  { %v450_v54 = vadd.f32 %v435_v45, %v414_v49  ;;  %v451_v30 = vadd.f32 %v435_v45, %v415_v50  ;;  %v452_v55 = vadd.f32 %v435_v45, %v416_v51  ;;  %v453_v56 = vadd.f32 %v435_v45, %v417_v52  ;;  %v1276_v45 = vld [vmem:[%s1936_s6 + $0x4] sm:$0xf]  ;;  %v1286_v49 = vld [vmem:[%s1936_s6 + $0xc] sm:$0xf]  ;;  %v1291_v50 = vld [vmem:[%s1936_s6 + $0x10] sm:$0xf] }
 0x2c5   :  { %v1296_v51 = vld [vmem:[%s1936_s6 + $0x14] sm:$0xf]  ;;  %v1301_v52 = vld [vmem:[%s1936_s6 + $0x18] sm:$0xf] }
 0x2c6   :  { %v466_v25 = vmax.f32 %v450_v54, 0.0  ;;  %v467_v2 = vmax.f32 %v451_v30, 0.0  ;;  %v468_v3 = vmax.f32 %v452_v55, 0.0  ;;  %v469_v5 = vmax.f32 %v453_v56, 0.0  ;;  %v1311_v55 = vld [vmem:[%s1936_s6 + $0x20] sm:$0xf] }
 0x2d1   :  { %v389_v48 = vpop.permute.xlu2 %388 }
 0x2d2   :  { %v406_v32 = vmul.f32 %v389_v48, %v1444_v9  ;;  %v407_v33 = vmul.f32 %v389_v48, %v1446_v10  ;;  %v408_v34 = vmul.f32 %v389_v48, %v1448_v11  ;;  %v409_v19 = vmul.f32 %v389_v48, %v1450_v12  ;;  %v1281_v48 = vld [vmem:[%s1936_s6 + $0x8] sm:$0xf] }
 0x2d9   :  { %v394_v57 = vpop.permute.xlu2 %393 }
 0x2da   :  { %v410_v1 = vmul.f32 %v394_v57, %v1452_v13  ;;  %v411_v20 = vmul.f32 %v394_v57, %v1454_v14  ;;  %v412_v21 = vmul.f32 %v394_v57, %v1456_v15  ;;  %v413_v22 = vmul.f32 %v394_v57, %v1458_v16 }
 0x2db   :  { %v404_v53 = vpop.permute.xlu0 %403 }
 0x2dc   :  { %v418_v58 = vmul.f32 %v404_v53, %v1477_v27  ;;  %v419_v59 = vmul.f32 %v404_v53, %v1479_v28  ;;  %v420_v60 = vmul.f32 %v404_v53, %v1492_v37  ;;  %v421_v17 = vmul.f32 %v404_v53, %v1496_v39  ;;  %v1306_v53 = vld [vmem:[%s1936_s6 + $0x1c] sm:$0xf]  ;;  %s1348_s6 = smov 16  }
 0x2df   :  { %v440_v61 = vpop.permute.xlu1 %439 }
 0x2e0   :  { %v454_v18 = vadd.f32 %v440_v61, %v418_v58  ;;  %v455_v62 = vadd.f32 %v440_v61, %v419_v59  ;;  %v456_v23 = vadd.f32 %v440_v61, %v420_v60  ;;  %v457_v63 = vadd.f32 %v440_v61, %v421_v17 }
 0x2e1   :  { %v430_v0 = vpop.permute.xlu2 %429 }
 0x2e2   :  { %v470_v6 = vmax.f32 %v454_v18, 0.0  ;;  %v471_v7 = vmax.f32 %v455_v62, 0.0  ;;  %v472_v4 = vmax.f32 %v456_v23, 0.0  ;;  %v473_v8 = vmax.f32 %v457_v63, 0.0 }
 0x2e3   :  { %v446_v24 = vadd.f32 %v430_v0, %v410_v1  ;;  %v447_v26 = vadd.f32 %v430_v0, %v411_v20  ;;  %v448_v29 = vadd.f32 %v430_v0, %v412_v21  ;;  %v449_v31 = vadd.f32 %v430_v0, %v413_v22 }
 0x2e4   :  { %v1566_v27 = vpack.c.bf16 %v470_v6, %v466_v25  ;;  %v1568_v28 = vpack.c.bf16 %v471_v7, %v467_v2  ;;  %v1570_v37 = vpack.c.bf16 %v472_v4, %v468_v3  ;;  %v1572_v39 = vpack.c.bf16 %v473_v8, %v469_v5 }
 0x2e5   :  { %v462_v15 = vmax.f32 %v446_v24, 0.0  ;;  %v463_v40 = vmax.f32 %v447_v26, 0.0  ;;  %v464_v16 = vmax.f32 %v448_v29, 0.0  ;;  %v465_v42 = vmax.f32 %v449_v31, 0.0 }
 0x2e6   :  { %501 = vmatpush.bf16.msrb.mxu0 %v1566_v27  ;;  %514 = vmatpush.bf16.msrb.mxu1 %v1568_v28 }
 0x2e7   :  { %527 = vmatpush.bf16.msrb.mxu2 %v1570_v37  ;;  %540 = vmatpush.bf16.msrb.mxu3 %v1572_v39 }
 0x2ed   :  { %v425_v35 = vpop.permute.xlu0 %424 }
 0x2ee   :  { %v442_v13 = vadd.f32 %v425_v35, %v406_v32  ;;  %v443_v36 = vadd.f32 %v425_v35, %v407_v33  ;;  %v444_v14 = vadd.f32 %v425_v35, %v408_v34  ;;  %v445_v38 = vadd.f32 %v425_v35, %v409_v19 }
 0x2f0   :  { %v458_v43 = vmax.f32 %v442_v13, 0.0  ;;  %v459_v44 = vmax.f32 %v443_v36, 0.0  ;;  %v460_v46 = vmax.f32 %v444_v14, 0.0  ;;  %v461_v47 = vmax.f32 %v445_v38, 0.0 }
 0x2f2   :  { %v1586_v9 = vpack.c.bf16 %v462_v15, %v458_v43  ;;  %v1588_v10 = vpack.c.bf16 %v463_v40, %v459_v44  ;;  %v1590_v11 = vpack.c.bf16 %v464_v16, %v460_v46  ;;  %v1592_v12 = vpack.c.bf16 %v465_v42, %v461_v47 }
 0x2f4   :  { %502 = vmatpush.bf16.msrb.mxu0 %v1586_v9  ;;  %515 = vmatpush.bf16.msrb.mxu1 %v1588_v10 }
 0x2f5   :  { %528 = vmatpush.bf16.msrb.mxu2 %v1590_v11  ;;  %541 = vmatpush.bf16.msrb.mxu3 %v1592_v12 }
 0x2f7   :  { %1272 = vmatmul.msk.bf16.vlgmr.msrb.gmra.mxu0 %vm491_vm3, %v490_v41  ;;  %1273 = vmatmul.msk.bf16.vlgmr.msrb.gmra.mxu1 %vm491_vm3, %v490_v41 }
 0x2f8   :  { %585 = vmatpush.bf16.msra.mxu0 %v1566_v27  ;;  %598 = vmatpush.bf16.msra.mxu1 %v1568_v28 }
 0x2f9   :  { %611 = vmatpush.bf16.msra.mxu2 %v1570_v37  ;;  %624 = vmatpush.bf16.msra.mxu3 %v1572_v39 }
 0x2fa   :  { %1274 = vmatmul.msk.bf16.vlgmr.msrb.gmra.mxu2 %vm491_vm3, %v490_v41  ;;  %1275 = vmatmul.msk.bf16.vlgmr.msrb.gmra.mxu3 %vm491_vm3, %v490_v41 }
 0x2fc   :  { %586 = vmatpush.bf16.msra.mxu0 %v1586_v9  ;;  %599 = vmatpush.bf16.msra.mxu1 %v1588_v10 }
 0x2fd   :  { %612 = vmatpush.bf16.msra.mxu2 %v1590_v11  ;;  %625 = vmatpush.bf16.msra.mxu3 %v1592_v12 }
 0x300   :  { %667 = vmatpush.bf16.msrb.mxu0 %v1566_v27  ;;  %680 = vmatpush.bf16.msrb.mxu1 %v1568_v28 }
 0x301   :  { %693 = vmatpush.bf16.msrb.mxu2 %v1570_v37  ;;  %706 = vmatpush.bf16.msrb.mxu3 %v1572_v39 }
 0x304   :  { %668 = vmatpush.bf16.msrb.mxu0 %v1586_v9  ;;  %681 = vmatpush.bf16.msrb.mxu1 %v1588_v10 }
 0x305   :  { %694 = vmatpush.bf16.msrb.mxu2 %v1590_v11  ;;  %707 = vmatpush.bf16.msrb.mxu3 %v1592_v12 }
 0x307   :  { %1277 = vmatmul.msk.bf16.vlgmr.msra.gmra.mxu0 %vm491_vm3, %v1276_v45  ;;  %1278 = vmatmul.msk.bf16.vlgmr.msra.gmra.mxu1 %vm491_vm3, %v1276_v45 }
 0x308   :  { %749 = vmatpush.bf16.msra.mxu0 %v1566_v27  ;;  %762 = vmatpush.bf16.msra.mxu1 %v1568_v28 }
 0x30a   :  { %1279 = vmatmul.msk.bf16.vlgmr.msra.gmra.mxu2 %vm491_vm3, %v1276_v45  ;;  %1280 = vmatmul.msk.bf16.vlgmr.msra.gmra.mxu3 %vm491_vm3, %v1276_v45 }
 0x30b   :  { %775 = vmatpush.bf16.msra.mxu2 %v1570_v37  ;;  %788 = vmatpush.bf16.msra.mxu3 %v1572_v39 }
 0x30c   :  { %750 = vmatpush.bf16.msra.mxu0 %v1586_v9  ;;  %763 = vmatpush.bf16.msra.mxu1 %v1588_v10 }
 0x30f   :  { %776 = vmatpush.bf16.msra.mxu2 %v1590_v11  ;;  %789 = vmatpush.bf16.msra.mxu3 %v1592_v12 }
 0x317   :  { %1282 = vmatmul.msk.bf16.vlgmr.msrb.gmra.mxu0 %vm491_vm3, %v1281_v48  ;;  %1283 = vmatmul.msk.bf16.vlgmr.msrb.gmra.mxu1 %vm491_vm3, %v1281_v48 }
 0x318   :  { %831 = vmatpush.bf16.msrb.mxu0 %v1566_v27  ;;  %844 = vmatpush.bf16.msrb.mxu1 %v1568_v28 }
 0x31a   :  { %1284 = vmatmul.msk.bf16.vlgmr.msrb.gmra.mxu2 %vm491_vm3, %v1281_v48  ;;  %1285 = vmatmul.msk.bf16.vlgmr.msrb.gmra.mxu3 %vm491_vm3, %v1281_v48 }
 0x31b   :  { %857 = vmatpush.bf16.msrb.mxu2 %v1570_v37  ;;  %870 = vmatpush.bf16.msrb.mxu3 %v1572_v39 }
 0x31c   :  { %832 = vmatpush.bf16.msrb.mxu0 %v1586_v9  ;;  %845 = vmatpush.bf16.msrb.mxu1 %v1588_v10 }
 0x31f   :  { %858 = vmatpush.bf16.msrb.mxu2 %v1590_v11  ;;  %871 = vmatpush.bf16.msrb.mxu3 %v1592_v12 }
 0x327   :  { %1287 = vmatmul.msk.bf16.vlgmr.msra.gmra.mxu0 %vm491_vm3, %v1286_v49  ;;  %1288 = vmatmul.msk.bf16.vlgmr.msra.gmra.mxu1 %vm491_vm3, %v1286_v49 }
 0x328   :  { %900 = vmatpush.bf16.msra.mxu0 %v1566_v27  ;;  %913 = vmatpush.bf16.msra.mxu1 %v1568_v28 }
 0x32a   :  { %1289 = vmatmul.msk.bf16.vlgmr.msra.gmra.mxu2 %vm491_vm3, %v1286_v49  ;;  %1290 = vmatmul.msk.bf16.vlgmr.msra.gmra.mxu3 %vm491_vm3, %v1286_v49 }
 0x32b   :  { %926 = vmatpush.bf16.msra.mxu2 %v1570_v37  ;;  %939 = vmatpush.bf16.msra.mxu3 %v1572_v39 }
 0x32c   :  { %901 = vmatpush.bf16.msra.mxu0 %v1586_v9  ;;  %914 = vmatpush.bf16.msra.mxu1 %v1588_v10 }
 0x32f   :  { %927 = vmatpush.bf16.msra.mxu2 %v1590_v11  ;;  %940 = vmatpush.bf16.msra.mxu3 %v1592_v12 }
 0x337   :  { %1292 = vmatmul.msk.bf16.vlgmr.msrb.gmra.mxu0 %vm491_vm3, %v1291_v50  ;;  %1293 = vmatmul.msk.bf16.vlgmr.msrb.gmra.mxu1 %vm491_vm3, %v1291_v50 }
 0x338   :  { %982 = vmatpush.bf16.msrb.mxu0 %v1566_v27  ;;  %995 = vmatpush.bf16.msrb.mxu1 %v1568_v28 }
 0x33a   :  { %1294 = vmatmul.msk.bf16.vlgmr.msrb.gmra.mxu2 %vm491_vm3, %v1291_v50  ;;  %1295 = vmatmul.msk.bf16.vlgmr.msrb.gmra.mxu3 %vm491_vm3, %v1291_v50 }
 0x33b   :  { %1008 = vmatpush.bf16.msrb.mxu2 %v1570_v37  ;;  %1021 = vmatpush.bf16.msrb.mxu3 %v1572_v39 }
 0x33c   :  { %983 = vmatpush.bf16.msrb.mxu0 %v1586_v9  ;;  %996 = vmatpush.bf16.msrb.mxu1 %v1588_v10 }
 0x33f   :  { %1009 = vmatpush.bf16.msrb.mxu2 %v1590_v11  ;;  %1022 = vmatpush.bf16.msrb.mxu3 %v1592_v12 }
 0x347   :  { %1297 = vmatmul.msk.bf16.vlgmr.msra.gmra.mxu0 %vm491_vm3, %v1296_v51  ;;  %1298 = vmatmul.msk.bf16.vlgmr.msra.gmra.mxu1 %vm491_vm3, %v1296_v51 }
 0x348   :  { %1064 = vmatpush.bf16.msra.mxu0 %v1566_v27  ;;  %1077 = vmatpush.bf16.msra.mxu1 %v1568_v28 }
 0x34a   :  { %1299 = vmatmul.msk.bf16.vlgmr.msra.gmra.mxu2 %vm491_vm3, %v1296_v51  ;;  %1300 = vmatmul.msk.bf16.vlgmr.msra.gmra.mxu3 %vm491_vm3, %v1296_v51 }
 0x34b   :  { %1090 = vmatpush.bf16.msra.mxu2 %v1570_v37  ;;  %1103 = vmatpush.bf16.msra.mxu3 %v1572_v39 }
 0x34c   :  { %1065 = vmatpush.bf16.msra.mxu0 %v1586_v9  ;;  %1078 = vmatpush.bf16.msra.mxu1 %v1588_v10 }
 0x34f   :  { %1091 = vmatpush.bf16.msra.mxu2 %v1590_v11  ;;  %1104 = vmatpush.bf16.msra.mxu3 %v1592_v12 }
 0x357   :  { %1302 = vmatmul.msk.bf16.vlgmr.msrb.gmra.mxu0 %vm491_vm3, %v1301_v52  ;;  %1303 = vmatmul.msk.bf16.vlgmr.msrb.gmra.mxu1 %vm491_vm3, %v1301_v52 }
 0x358   :  { %1146 = vmatpush.bf16.msrb.mxu0 %v1566_v27  ;;  %1159 = vmatpush.bf16.msrb.mxu1 %v1568_v28 }
 0x35a   :  { %1304 = vmatmul.msk.bf16.vlgmr.msrb.gmra.mxu2 %vm491_vm3, %v1301_v52  ;;  %1305 = vmatmul.msk.bf16.vlgmr.msrb.gmra.mxu3 %vm491_vm3, %v1301_v52 }
 0x35b   :  { %1172 = vmatpush.bf16.msrb.mxu2 %v1570_v37  ;;  %1185 = vmatpush.bf16.msrb.mxu3 %v1572_v39 }
 0x35c   :  { %1147 = vmatpush.bf16.msrb.mxu0 %v1586_v9  ;;  %1160 = vmatpush.bf16.msrb.mxu1 %v1588_v10 }
 0x35f   :  { %1173 = vmatpush.bf16.msrb.mxu2 %v1590_v11  ;;  %1186 = vmatpush.bf16.msrb.mxu3 %v1592_v12  ;;  %v555_v12 = vlaneseq }
 0x361   :  { %v1733_v41 = vand.u32 127, %v555_v12 }
 0x363   :  { %vm557_vm4 = vcmp.lt.s32.totalorder %v1733_v41, 17  ;;  %vm639_vm5 = vcmp.lt.s32.totalorder %v1733_v41, 16  ;;  %vm721_vm6 = vcmp.lt.s32.totalorder %v1733_v41, 15  ;;  %vm803_vm7 = vcmp.lt.s32.totalorder %v1733_v41, 1 }
 0x364   :  { %vm954_vm8 = vcmp.lt.s32.totalorder %v1733_v41, 127  ;;  %vm1036_vm9 = vcmp.lt.s32.totalorder %v1733_v41, 113  ;;  %vm1118_vm10 = vcmp.lt.s32.totalorder %v1733_v41, 112  ;;  %vm1200_vm11 = vcmp.lt.s32.totalorder %v1733_v41, 111 }
 0x367   :  { %1307 = vmatmul.msk.bf16.vlgmr.msra.gmra.mxu0 %vm491_vm3, %v1306_v53  ;;  %1308 = vmatmul.msk.bf16.vlgmr.msra.gmra.mxu1 %vm491_vm3, %v1306_v53 }
 0x36a   :  { %1309 = vmatmul.msk.bf16.vlgmr.msra.gmra.mxu2 %vm491_vm3, %v1306_v53  ;;  %1310 = vmatmul.msk.bf16.vlgmr.msra.gmra.mxu3 %vm491_vm3, %v1306_v53 }
 0x374   :  { %v504_v54 = vpop.f32.mrf.mxu0  ;;  %v517_v30 = vpop.f32.mrf.mxu1 }
 0x375   :  { %549 = vrot.lane.b32.xlu0 %v517_v30, %s1347_s19  ;;  %547 = vrot.lane.b32.xlu1 %v504_v54, %s1347_s19 }
 0x377   :  { %1312 = vmatmul.msk.bf16.vlgmr.msrb.gmra.mxu0 %vm491_vm3, %v1311_v55  ;;  %1313 = vmatmul.msk.bf16.vlgmr.msrb.gmra.mxu1 %vm491_vm3, %v1311_v55 }
 0x37a   :  { %1314 = vmatmul.msk.bf16.vlgmr.msrb.gmra.mxu2 %vm491_vm3, %v1311_v55  ;;  %1315 = vmatmul.msk.bf16.vlgmr.msrb.gmra.mxu3 %vm491_vm3, %v1311_v55 }
 0x37c   :  { %v506_v58 = vpop.f32.mrf.mxu0  ;;  %v519_v59 = vpop.f32.mrf.mxu1 }
 0x37d   :  { %v530_v56 = vpop.f32.mrf.mxu2  ;;  %v543_v57 = vpop.f32.mrf.mxu3 }
 0x37e   :  { %551 = vrot.lane.b32.xlu2 %v530_v56, %s1347_s19  ;;  %553 = vrot.lane.b32.xlu1 %v543_v57, %s1347_s19 }
 0x384   :  { %v588_v61 = vpop.f32.mrf.mxu0  ;;  %v601_v18 = vpop.f32.mrf.mxu1 }
 0x385   :  { %v532_v60 = vpop.f32.mrf.mxu2  ;;  %v545_v17 = vpop.f32.mrf.mxu3  ;;  %631 = vrot.lane.b32.xlu0 %v588_v61, %s1348_s6 }
 0x386   :  { %633 = vrot.lane.b32.xlu2 %v601_v18, %s1348_s6 }
 0x38c   :  { %v590_v63 = vpop.f32.mrf.mxu0  ;;  %v603_v25 = vpop.f32.mrf.mxu1 }
 0x38d   :  { %v614_v62 = vpop.f32.mrf.mxu2  ;;  %v627_v23 = vpop.f32.mrf.mxu3 }
 0x38e   :  { %635 = vrot.lane.b32.xlu1 %v614_v62, %s1348_s6  ;;  %637 = vrot.lane.b32.xlu0 %v627_v23, %s1348_s6 }
 0x394   :  { %v670_v5 = vpop.f32.mrf.mxu0  ;;  %v683_v6 = vpop.f32.mrf.mxu1 }
 0x395   :  { %v616_v2 = vpop.f32.mrf.mxu2  ;;  %v629_v3 = vpop.f32.mrf.mxu3  ;;  %713 = vrot.lane.b32.xlu2 %v670_v5, %s1349_s20 }
 0x396   :  { %715 = vrot.lane.b32.xlu1 %v683_v6, %s1349_s20 }
 0x39c   :  { %v685_v8 = vpop.f32.mrf.mxu1  ;;  %v672_v27 = vpop.f32.mrf.mxu0 }
 0x39d   :  { %v696_v7 = vpop.f32.mrf.mxu2  ;;  %v709_v4 = vpop.f32.mrf.mxu3  ;;  %v1758_v27 = vld [vmem:[%s1937_s7 + $0x8] sm:$0xff] }
 0x39e   :  { %717 = vrot.lane.b32.xlu0 %v696_v7, %s1349_s20  ;;  %719 = vrot.lane.b32.xlu2 %v709_v4, %s1349_s20 }
 0x3a4   :  { %v765_v39 = vpop.f32.mrf.mxu1  ;;  %v752_v0 = vpop.f32.mrf.mxu0 }
 0x3a5   :  { %v698_v28 = vpop.f32.mrf.mxu2  ;;  %v711_v37 = vpop.f32.mrf.mxu3  ;;  %795 = vrot.lane.b32.xlu1 %v752_v0, %s1350_s21 }
 0x3a6   :  { %797 = vrot.lane.b32.xlu0 %v765_v39, %s1350_s21  ;;  %v1763_v28 = vld [vmem:[%s1937_s7 + $0x10] sm:$0xff]  ;;  %v645_v39 = vperm.slane %v1758_v27, 1 }
 0x3a7   :  { %v646_v0 = vperm.slane %v1763_v28, 1 }
 0x3ac   :  { %v754_v21 = vpop.f32.mrf.mxu0  ;;  %v767_v22 = vpop.f32.mrf.mxu1 }
 0x3ad   :  { %v778_v1 = vpop.f32.mrf.mxu2  ;;  %v791_v20 = vpop.f32.mrf.mxu3  ;;  %v564_v21 = vperm.slane %v1763_v28, 0  ;;  %v563_v22 = vperm.slane %v1758_v27, 0 }
 0x3ae   :  { %799 = vrot.lane.b32.xlu2 %v778_v1, %s1350_s21  ;;  %801 = vrot.lane.b32.xlu1 %v791_v20, %s1350_s21 }
 0x3b4   :  { %v1725_v29 = vpop.f32.mrf.mxu0  ;;  %v1727_v31 = vpop.f32.mrf.mxu1 }
 0x3b5   :  { %v780_v24 = vpop.f32.mrf.mxu2  ;;  %v793_v26 = vpop.f32.mrf.mxu3 }
 0x3bc   :  { %v849_v34 = vpop.f32.mrf.mxu1  ;;  %v836_v19 = vpop.f32.mrf.mxu0 }
 0x3bd   :  { %v1729_v32 = vpop.f32.mrf.mxu2  ;;  %v1731_v33 = vpop.f32.mrf.mxu3  ;;  %v727_v34 = vperm.slane %v1758_v27, 2  ;;  %v728_v19 = vperm.slane %v1763_v28, 2 }
 0x3c4   :  { %v903_v36 = vpop.f32.mrf.mxu0  ;;  %v916_v14 = vpop.f32.mrf.mxu1 }
 0x3c5   :  { %v862_v35 = vpop.f32.mrf.mxu2  ;;  %v875_v13 = vpop.f32.mrf.mxu3  ;;  %946 = vrot.lane.b32.xlu0 %v903_v36, %s1351_s22  ;;  %948 = vrot.lane.b32.xlu2 %v916_v14, %s1351_s22 }
 0x3cc   :  { %v905_v40 = vpop.f32.mrf.mxu0  ;;  %v918_v16 = vpop.f32.mrf.mxu1 }
 0x3cd   :  { %v929_v38 = vpop.f32.mrf.mxu2  ;;  %v942_v15 = vpop.f32.mrf.mxu3  ;;  %v1788_v40 = vld [vmem:[%s1937_s7 + $0x18] sm:$0xff] }
 0x3ce   :  { %950 = vrot.lane.b32.xlu1 %v929_v38, %s1351_s22  ;;  %952 = vrot.lane.b32.xlu0 %v942_v15, %s1351_s22 }
 0x3d4   :  { %v998_v44 = vpop.f32.mrf.mxu1  ;;  %v985_v46 = vpop.f32.mrf.mxu0 }
 0x3d5   :  { %v931_v42 = vpop.f32.mrf.mxu2  ;;  %v944_v43 = vpop.f32.mrf.mxu3  ;;  %1028 = vrot.lane.b32.xlu2 %v985_v46, %s1352_s23  ;;  %v878_v46 = vperm.slane %v1758_v27, 4 }
 0x3d6   :  { %1030 = vrot.lane.b32.xlu1 %v998_v44, %s1352_s23  ;;  %v810_v43 = vperm.slane %v1763_v28, 3  ;;  %v809_v44 = vperm.slane %v1758_v27, 3 }
 0x3d8   :  { %v1736_v51 = vpop.permute.xlu2 %551 }
 0x3dc   :  { %v1000_v10 = vpop.f32.mrf.mxu1  ;;  %v987_v11 = vpop.f32.mrf.mxu0 }
 0x3dd   :  { %v1011_v47 = vpop.f32.mrf.mxu2  ;;  %v1024_v9 = vpop.f32.mrf.mxu3 }
 0x3de   :  { %1032 = vrot.lane.b32.xlu0 %v1011_v47, %s1352_s23  ;;  %1034 = vrot.lane.b32.xlu2 %v1024_v9, %s1352_s23  ;;  %v879_v47 = vperm.slane %v1763_v28, 4  ;;  %v565_v9 = vperm.slane %v1788_v40, 0 }
 0x3e0   :  { %v634_v18 = vpop.permute.xlu2 %633 }
 0x3e4   :  { %v1080_v49 = vpop.f32.mrf.mxu1  ;;  %v1067_v50 = vpop.f32.mrf.mxu0 }
 0x3e5   :  { %v1013_v45 = vpop.f32.mrf.mxu2  ;;  %v1026_v48 = vpop.f32.mrf.mxu3  ;;  %1110 = vrot.lane.b32.xlu1 %v1067_v50, %s1353_s24 }
 0x3e6   :  { %1112 = vrot.lane.b32.xlu0 %v1080_v49, %s1353_s24  ;;  %v647_v45 = vperm.slane %v1788_v40, 1  ;;  %v729_v48 = vperm.slane %v1788_v40, 2 }
 0x3e7   :  { %v550_v52 = vpop.permute.xlu0 %549  ;;  %v1738_v53 = vpop.permute.xlu1 %547 }
 0x3e8   :  { %v559_v54 = vsel %vm557_vm4, %v550_v52, %v1736_v51  ;;  %v560_v30 = vsel %vm557_vm4, %v1738_v53, %v550_v52 }
 0x3e9   :  { %v568_v38 = vmul.f32 %v564_v21, %v559_v54  ;;  %v567_v15 = vmul.f32 %v563_v22, %v560_v30 }
 0x3ec   :  { %v1069_v57 = vpop.f32.mrf.mxu0  ;;  %v1082_v58 = vpop.f32.mrf.mxu1 }
 0x3ed   :  { %v1093_v55 = vpop.f32.mrf.mxu2  ;;  %v1106_v56 = vpop.f32.mrf.mxu3 }
 0x3ee   :  { %1114 = vrot.lane.b32.xlu2 %v1093_v55, %s1353_s24  ;;  %1116 = vrot.lane.b32.xlu1 %v1106_v56, %s1353_s24 }
 0x3ef   :  { %v1750_v7 = vpop.permute.xlu2 %713 }
 0x3f0   :  { %v1748_v3 = vpop.permute.xlu1 %553 }
 0x3f1   :  { %v558_v52 = vsel %vm557_vm4, %v1736_v51, %v1748_v3 }
 0x3f4   :  { %v1149_v17 = vpop.f32.mrf.mxu0  ;;  %v1162_v61 = vpop.f32.mrf.mxu1 }
 0x3f5   :  { %v1095_v59 = vpop.f32.mrf.mxu2  ;;  %v1108_v60 = vpop.f32.mrf.mxu3  ;;  %1192 = vrot.lane.b32.xlu0 %v1149_v17, %s1354_s25  ;;  %v883_v17 = vmul.f32 %v879_v47, %v1729_v32 }
 0x3f6   :  { %1194 = vrot.lane.b32.xlu2 %v1162_v61, %s1354_s25  ;;  %v882_v60 = vmul.f32 %v878_v46, %v1727_v31 }
 0x3f7   :  { %v1746_v2 = vpop.permute.xlu0 %631 }
 0x3f8   :  { %v1765_v37 = vpop.permute.xlu2 %719  ;;  %v642_v24 = vsel %vm639_vm5, %v1746_v2, %v634_v18 }
 0x3f9   :  { %v649_v36 = vmul.f32 %v645_v39, %v642_v24 }
 0x3fb   :  { %v653_v11 = vadd.f32 %v649_v36, %v567_v15 }
 0x3fc   :  { %v1151_v63 = vpop.f32.mrf.mxu0  ;;  %v1164_v25 = vpop.f32.mrf.mxu1 }
 0x3fd   :  { %v1175_v62 = vpop.f32.mrf.mxu2  ;;  %v1188_v23 = vpop.f32.mrf.mxu3  ;;  %v811_v25 = vperm.slane %v1788_v40, 3 }
 0x3fe   :  { %1196 = vrot.lane.b32.xlu1 %v1175_v62, %s1354_s25  ;;  %1198 = vrot.lane.b32.xlu0 %v1188_v23, %s1354_s25  ;;  %v569_v23 = vmul.f32 %v565_v9, %v558_v52  ;;  %v725_v9 = vsel %vm721_vm6, %v1765_v37, %v1750_v7 }
 0x400   :  { %v636_v4 = vpop.permute.xlu1 %635  ;;  %v1752_v8 = vpop.permute.xlu0 %637 }
 0x401   :  { %v641_v26 = vsel %vm639_vm5, %v634_v18, %v636_v4  ;;  %v640_v54 = vsel %vm639_vm5, %v636_v4, %v1752_v8  ;;  %v880_v4 = vperm.slane %v1788_v40, 4 }
 0x402   :  { %v650_v14 = vmul.f32 %v646_v0, %v641_v26  ;;  %v651_v61 = vmul.f32 %v647_v45, %v640_v54 }
 0x404   :  { %v654_v12 = vadd.f32 %v650_v14, %v568_v38  ;;  %v655_v31 = vadd.f32 %v651_v61, %v569_v23  ;;  %v643_v14 = vsel %vm639_vm5, %v1752_v8, %v1746_v2 }
 0x405   :  { %v1177_v5 = vpop.f32.mrf.mxu2  ;;  %v1190_v6 = vpop.f32.mrf.mxu3 }
 0x408   :  { %v716_v1 = vpop.permute.xlu1 %715  ;;  %v800_v10 = vpop.permute.xlu2 %799 }
 0x409   :  { %v724_v35 = vsel %vm721_vm6, %v1750_v7, %v716_v1 }
 0x40a   :  { %v731_v16 = vmul.f32 %v727_v34, %v724_v35 }
 0x40c   :  { %v735_v56 = vadd.f32 %v731_v16, %v653_v11 }
 0x410   :  { %v718_v20 = vpop.permute.xlu0 %717 }
 0x411   :  { %v723_v13 = vsel %vm721_vm6, %v716_v1, %v718_v20  ;;  %v722_v51 = vsel %vm721_vm6, %v718_v20, %v1765_v37  ;;  %v884_v20 = vmul.f32 %v880_v4, %v1731_v33  ;;  %v561_v33 = vsel %vm557_vm4, %v1748_v3, %v1738_v53 }
 0x412   :  { %v732_v42 = vmul.f32 %v728_v19, %v723_v13  ;;  %v733_v63 = vmul.f32 %v729_v48, %v722_v51  ;;  %v482_v13 = vld [vmem:[%s1937_s7] sm:$0xff]  ;;  %v960_v51 = vperm.slane %v1758_v27, 5 }
 0x413   :  { %v644_v36 = vperm.slane %v482_v13, 1  ;;  %v562_v38 = vperm.slane %v482_v13, 0  ;;  %v808_v46 = vperm.slane %v482_v13, 3  ;;  %v877_v3 = vperm.slane %v482_v13, 4 }
 0x414   :  { %v736_v57 = vadd.f32 %v732_v42, %v654_v12  ;;  %v737_v1 = vadd.f32 %v733_v63, %v655_v31  ;;  %v959_v45 = vperm.slane %v482_v13, 5  ;;  %v1041_v7 = vperm.slane %v482_v13, 6 }
 0x415   :  { %v648_v16 = vmul.f32 %v644_v36, %v643_v14  ;;  %v881_v54 = vmul.f32 %v877_v3, %v1725_v29  ;;  %v1042_v29 = vperm.slane %v1758_v27, 6  ;;  %v1126_v36 = vperm.slane %v1788_v40, 7 }
 0x417   :  { %v796_v50 = vpop.permute.xlu1 %795 }
 0x418   :  { %v798_v49 = vpop.permute.xlu0 %797 }
 0x419   :  { %v805_v30 = vsel %vm803_vm7, %v798_v49, %v800_v10  ;;  %v806_v55 = vsel %vm803_vm7, %v796_v50, %v798_v49 }
 0x41a   :  { %v814_v58 = vmul.f32 %v810_v43, %v805_v30  ;;  %v813_v59 = vmul.f32 %v809_v44, %v806_v55  ;;  %v566_v43 = vmul.f32 %v562_v38, %v561_v33  ;;  %v726_v44 = vperm.slane %v482_v13, 2 }
 0x41b   :  { %v1123_v55 = vperm.slane %v482_v13, 7 }
 0x41c   :  { %v818_v18 = vadd.f32 %v814_v58, %v736_v57  ;;  %v817_v62 = vadd.f32 %v813_v59, %v735_v56  ;;  %v652_v8 = vadd.f32 %v648_v16, %v566_v43  ;;  %v1044_v58 = vperm.slane %v1788_v40, 6 }
 0x41d   :  { %v962_v59 = vperm.slane %v1788_v40, 5 }
 0x41e   :  { %v1814_v5 = vadd.f32 %v882_v60, %v817_v62  ;;  %v1816_v6 = vadd.f32 %v883_v17, %v818_v18  ;;  %v961_v17 = vperm.slane %v1763_v28, 5 }
 0x41f   :  { %v949_v24 = vpop.permute.xlu2 %948 }
 0x420   :  { %v802_v39 = vpop.permute.xlu1 %801 }
 0x421   :  { %v804_v0 = vsel %vm803_vm7, %v800_v10, %v802_v39  ;;  %v807_v2 = vsel %vm803_vm7, %v802_v39, %v796_v50  ;;  %v730_v10 = vmul.f32 %v726_v44, %v725_v9  ;;  %v1043_v39 = vperm.slane %v1763_v28, 6  ;;  %v1332_v9 = vld [vmem:[%s1937_s7 + $0x28] ss:$0 sm:$0xff] }
 0x422   :  { %v815_v32 = vmul.f32 %v811_v25, %v804_v0  ;;  %v812_v11 = vmul.f32 %v808_v46, %v807_v2  ;;  %v1331_v25 = vld [vmem:[%s1937_s7 + $0x20] ss:$0 sm:$0xff]  ;;  %v1124_v0 = vperm.slane %v1758_v27, 7 }
 0x423   :  { %v734_v12 = vadd.f32 %v730_v10, %v652_v8 }
 0x424   :  { %v819_v21 = vadd.f32 %v815_v32, %v737_v1 }
 0x425   :  { %v816_v52 = vadd.f32 %v812_v11, %v734_v12 }
 0x426   :  { %v1822_v22 = vadd.f32 %v884_v20, %v819_v21 }
 0x427   :  { %v885_v57 = vadd.f32 %v881_v54, %v816_v52 }
 0x42f   :  { %v1029_v34 = vpop.permute.xlu2 %1028 }
 0x437   :  { %v947_v26 = vpop.permute.xlu0 %946 }
 0x438   :  { %v1035_v42 = vpop.permute.xlu2 %1034  ;;  %v957_v49 = vsel %vm954_vm8, %v947_v26, %v949_v24 }
 0x439   :  { %v963_v30 = vmul.f32 %v959_v45, %v957_v49  ;;  %v1040_v4 = vsel %vm1036_vm9, %v1035_v42, %v1029_v34 }
 0x43a   :  { %v1048_v44 = vmul.f32 %v1044_v58, %v1040_v4  ;;  %v1221_v58 = vld.sshfl [vmem:[#allocation1 + $0x8] sm:$0xff pattern:$0x75316420] }
 0x43b   :  { %v967_v18 = vadd.f32 %v963_v30, %v885_v57 }
 0x440   :  { %v951_v19 = vpop.permute.xlu1 %950  ;;  %v953_v35 = vpop.permute.xlu0 %952 }
 0x441   :  { %v958_v61 = vsel %vm954_vm8, %v953_v35, %v947_v26  ;;  %v956_v62 = vsel %vm954_vm8, %v949_v24, %v951_v19  ;;  %v955_v31 = vsel %vm954_vm8, %v951_v19, %v953_v35  ;;  %v1125_v24 = vperm.slane %v1763_v28, 7 }
 0x442   :  { %v966_v32 = vmul.f32 %v962_v59, %v958_v61  ;;  %v964_v13 = vmul.f32 %v960_v51, %v956_v62  ;;  %v965_v35 = vmul.f32 %v961_v17, %v955_v31  ;;  %v1222_v59 = vld.sshfl [vmem:[#allocation1 + $0x10] sm:$0xff pattern:$0x75316420]  ;;  %v1223_v61 = vld.sshfl [vmem:[#allocation1 + $0x18] sm:$0xff pattern:$0x75316420] }
 0x444   :  { %v970_v16 = vadd.f32 %v966_v32, %v1822_v22  ;;  %v968_v43 = vadd.f32 %v964_v13, %v1814_v5  ;;  %v969_v2 = vadd.f32 %v965_v35, %v1816_v6  ;;  %v1333_v22 = vld [vmem:[%s1937_s7 + $0x30] ss:$0 sm:$0xff]  ;;  %v1334_v5 = vld [vmem:[%s1937_s7 + $0x38] ss:$0 sm:$0xff] }
 0x446   :  { %v1052_v45 = vadd.f32 %v1048_v44, %v970_v16 }
 0x448   :  { %v1031_v15 = vpop.permute.xlu1 %1030  ;;  %v1115_v48 = vpop.permute.xlu2 %1114 }
 0x449   :  { %v1039_v50 = vsel %vm1036_vm9, %v1029_v34, %v1031_v15 }
 0x44a   :  { %v1045_v60 = vmul.f32 %v1041_v7, %v1039_v50 }
 0x44c   :  { %v1049_v20 = vadd.f32 %v1045_v60, %v967_v18 }
 0x450   :  { %v1033_v47 = vpop.permute.xlu0 %1032  ;;  %v1195_v63 = vpop.permute.xlu2 %1194 }
 0x451   :  { %v1038_v21 = vsel %vm1036_vm9, %v1031_v15, %v1033_v47  ;;  %v1037_v34 = vsel %vm1036_vm9, %v1033_v47, %v1035_v42  ;;  %v1220_v47 = vld.sshfl [vmem:[#allocation1] sm:$0xff pattern:$0x75316420] }
 0x452   :  { %v1046_v33 = vmul.f32 %v1042_v29, %v1038_v21  ;;  %v1047_v42 = vmul.f32 %v1043_v39, %v1037_v34 }
 0x454   :  { %v1051_v12 = vadd.f32 %v1047_v42, %v969_v2 }
 0x457   :  { %v1111_v53 = vpop.permute.xlu1 %1110 }
 0x458   :  { %v1113_v37 = vpop.permute.xlu0 %1112 }
 0x459   :  { %v1121_v56 = vsel %vm1118_vm10, %v1111_v53, %v1113_v37  ;;  %v1120_v27 = vsel %vm1118_vm10, %v1113_v37, %v1115_v48 }
 0x45a   :  { %v1127_v23 = vmul.f32 %v1123_v55, %v1121_v56  ;;  %v1128_v46 = vmul.f32 %v1124_v0, %v1120_v27 }
 0x45c   :  { %v1131_v14 = vadd.f32 %v1127_v23, %v1049_v20 }
 0x460   :  { %v1117_v1 = vpop.permute.xlu1 %1116 }
 0x461   :  { %v1119_v28 = vsel %vm1118_vm10, %v1115_v48, %v1117_v1  ;;  %v1122_v15 = vsel %vm1118_vm10, %v1117_v1, %v1111_v53  ;;  %v1050_v53 = vadd.f32 %v1046_v33, %v968_v43 }
 0x462   :  { %v1129_v8 = vmul.f32 %v1125_v24, %v1119_v28  ;;  %v1130_v10 = vmul.f32 %v1126_v36, %v1122_v15 }
 0x463   :  { %v1132_v52 = vadd.f32 %v1128_v46, %v1050_v53 }
 0x464   :  { %v1133_v54 = vadd.f32 %v1129_v8, %v1051_v12  ;;  %v1134_v30 = vadd.f32 %v1130_v10, %v1052_v45 }
 0x467   :  { %v1193_v26 = vpop.permute.xlu0 %1192 }
 0x468   :  { %v1203_v19 = vsel %vm1200_vm11, %v1193_v26, %v1195_v63 }
 0x469   :  { %v1209_v38 = vmul.f32 %v1331_v25, %v1203_v19 }
 0x46b   :  { %v1213_v40 = vadd.f32 %v1209_v38, %v1131_v14 }
 0x46d   :  { %v1232_v11 = vrot.slane %v1213_v40, 4 }
 0x46f   :  { %v1240_v48 = vsel %vm45_vm0, %v1220_v47, %v1232_v11  ;;  %1248 = vst [vmem:[%s1938_s8 + $0x20] sm:$0xf] %v1232_v11 }
 0x470   :  { %v1197_v3 = vpop.permute.xlu1 %1196  ;;  %v1199_v49 = vpop.permute.xlu0 %1198  ;;  %1244 = vst [vmem:[%s1938_s8] sm:$0xff] %v1240_v48 }
 0x471   :  { %v1202_v6 = vsel %vm1200_vm11, %v1195_v63, %v1197_v3  ;;  %v1201_v37 = vsel %vm1200_vm11, %v1197_v3, %v1199_v49  ;;  %v1204_v50 = vsel %vm1200_vm11, %v1199_v49, %v1193_v26 }
 0x472   :  { %v1210_v7 = vmul.f32 %v1332_v9, %v1202_v6  ;;  %v1211_v55 = vmul.f32 %v1333_v22, %v1201_v37  ;;  %v1212_v56 = vmul.f32 %v1334_v5, %v1204_v50 }
 0x474   :  { %v1214_v57 = vadd.f32 %v1210_v7, %v1132_v52  ;;  %v1215_v60 = vadd.f32 %v1211_v55, %v1133_v54  ;;  %v1216_v51 = vadd.f32 %v1212_v56, %v1134_v30 }
 0x476   :  { %v1233_v17 = vrot.slane %v1214_v57, 4  ;;  %v1234_v29 = vrot.slane %v1215_v60, 4  ;;  %v1235_v18 = vrot.slane %v1216_v51, 4 }
 0x478   :  { %v1241_v62 = vsel %vm45_vm0, %v1221_v58, %v1233_v17  ;;  %1249 = vst [vmem:[%s1938_s8 + $0x28] sm:$0xf] %v1233_v17  ;;  %v1242_v41 = vsel %vm45_vm0, %v1222_v59, %v1234_v29  ;;  %v1243_v23 = vsel %vm45_vm0, %v1223_v61, %v1235_v18 }
 0x479   :  { %1245 = vst [vmem:[%s1938_s8 + $0x8] sm:$0xff] %v1241_v62 }
 0x47a   :  { %1246 = vst [vmem:[%s1938_s8 + $0x10] sm:$0xff] %v1242_v41 }
 0x47b   :  { %1247 = vst [vmem:[%s1938_s8 + $0x18] sm:$0xff] %v1243_v23 }
 0x47c   :  { %1250 = vst [vmem:[%s1938_s8 + $0x30] sm:$0xf] %v1234_v29 }
 0x47d   :  { %1251 = vst [vmem:[%s1938_s8 + $0x38] sm:$0xf] %v1235_v18 }

</bundles_post_ra>
